<compile_context>
chip_gen: v6e
topology: v6e:2x2x1
jax: 0.10.0
libtpu: 0.0.40
codegen_flags: <defaults>
</compile_context>

<pallas_src>
import functools

import jax
import jax.numpy as jnp
from jax.experimental import pallas as pl
from jax.experimental.pallas import tpu as pltpu

_NEG_LARGE = jnp.finfo(jnp.float32).min


# ---------------------------------------------------------------------------
# VMEM budgeting / tile selection
# ---------------------------------------------------------------------------
def _vmem_limit_bytes():
    """Scoped VMEM limit to request: half of physical, capped at 64 MiB."""
    cap = 64 * 1024 * 1024                      # conservative default (v7x)
    try:
        cap = int(pltpu.get_tpu_info().vmem_capacity_bytes)
    except Exception:
        pass
    return min(cap // 2, 64 * 1024 * 1024)      # v5e/v6e: 64 MiB, v7x: 32 MiB


def _spatial_tile(c, s, dsize, vmem_limit):
    """Spatial (lane) tile for the streaming path.

    Budget ~vmem_limit/6 bytes per (1, C, ts) tile: the scale kernel keeps
    ~4-5 live tile buffers (input + output, double-buffered) plus headroom.
    Returns (tile, needs_mask).
    """
    elem = max(dsize, 4)                        # kernels upcast to f32
    budget = max(vmem_limit // 6, 256 * 1024)
    max_lanes = max(budget // (c * elem), 128)
    max_lanes = min(max_lanes, s)
    # Largest multiple of 128 that divides S (no masking needed).
    t = (max_lanes // 128) * 128
    while t >= 128:
        if s % t == 0:
            return t, False
        t -= 128
    # No 128-aligned divisor within budget: cdiv grid with a masked tail tile.
    t = min((max_lanes // 128) * 128, ((s + 127) // 128) * 128)
    return max(t, 128), True


# ---------------------------------------------------------------------------
# Shared MLP epilogue (f32):
#   att = sigmoid( relu(avg@W1)@W2 + relu(max@W1)@W2 )
#       = sigmoid( (relu(avg@W1) + relu(max@W1)) @ W2 )   (fc2 is linear)
# ---------------------------------------------------------------------------
def _mlp_sigmoid(avg, mx, w1, w2):
    h = (jnp.maximum(jnp.dot(avg, w1, preferred_element_type=jnp.float32), 0.0)
         + jnp.maximum(jnp.dot(mx, w1, preferred_element_type=jnp.float32), 0.0))
    o = jnp.dot(h, w2, preferred_element_type=jnp.float32)
    return jax.nn.sigmoid(o)


# ---------------------------------------------------------------------------
# Path A: fully fused kernel (x VMEM-resident) — pooling + MLP + scaling.
# ---------------------------------------------------------------------------
def _fused_kernel(x_ref, w1_ref, w2_ref, y_ref, att_ref, *, inv_s):
    x = x_ref[...].astype(jnp.float32)                    # (B, C, S)
    avg = jnp.sum(x, axis=-1) * inv_s                     # (B, C)
    mx = jnp.max(x, axis=-1)                              # (B, C)
    att = _mlp_sigmoid(avg, mx, w1_ref[...], w2_ref[...])  # (B, C)
    att_ref[...] = att[:, :, None]                        # (B, C, 1)
    y_ref[...] = (x * att[:, :, None]).astype(y_ref.dtype)


def _fused_forward(x3, w1, w2, vmem_limit):
    B, C, S = x3.shape
    Cr = w1.shape[1]
    y3, att = pl.pallas_call(
        functools.partial(_fused_kernel, inv_s=1.0 / float(S)),
        out_shape=(jax.ShapeDtypeStruct((B, C, S), x3.dtype),
                   jax.ShapeDtypeStruct((B, C, 1), jnp.float32)),
        grid=(1,),
        in_specs=[pl.BlockSpec((B, C, S), lambda i: (0, 0, 0)),
                  pl.BlockSpec((C, Cr), lambda i: (0, 0)),
                  pl.BlockSpec((Cr, C), lambda i: (0, 0))],
        out_specs=(pl.BlockSpec((B, C, S), lambda i: (0, 0, 0)),
                   pl.BlockSpec((B, C, 1), lambda i: (0, 0, 0))),
        compiler_params=pltpu.CompilerParams(
            dimension_semantics=("arbitrary",),
            vmem_limit_bytes=vmem_limit),
    )(x3, w1, w2)
    return y3, att


# ---------------------------------------------------------------------------
# Path B, kernel 1: streaming avg+max pooling with the MLP fused into the
# finalize step.  grid = (B, S-tiles); per-batch resident accumulators.
# ---------------------------------------------------------------------------
def _pool_mlp_kernel(x_ref, w1_ref, w2_ref, att_ref, sum_sc, max_sc, *,
                     inv_s, tile, total_s, needs_mask):
    s = pl.program_id(1)
    x = x_ref[...].astype(jnp.float32)                    # (1, C, ts)
    if needs_mask:
        lane = jax.lax.broadcasted_iota(jnp.int32, x.shape, dimension=2)
        valid = (lane + s * tile) < total_s
        x_sum = jnp.where(valid, x, 0.0)
        x_max = jnp.where(valid, x, _NEG_LARGE)
    else:
        x_sum = x
        x_max = x
    part_sum = jnp.sum(x_sum, axis=-1)                    # (1, C)
    part_max = jnp.max(x_max, axis=-1)                    # (1, C)

    @pl.when(s == 0)
    def _():
        sum_sc[...] = part_sum
        max_sc[...] = part_max

    @pl.when(s > 0)
    def _():
        sum_sc[...] = sum_sc[...] + part_sum
        max_sc[...] = jnp.maximum(max_sc[...], part_max)

    @pl.when(s == pl.num_programs(1) - 1)
    def _():
        avg = sum_sc[...] * inv_s                         # (1, C)
        att = _mlp_sigmoid(avg, max_sc[...], w1_ref[...], w2_ref[...])
        att_ref[...] = att[:, :, None]                    # (1, C, 1)


def _pool_mlp(x3, w1, w2, ts, needs_mask, vmem_limit):
    B, C, S = x3.shape
    Cr = w1.shape[1]
    ns = pl.cdiv(S, ts)
    return pl.pallas_call(
        functools.partial(_pool_mlp_kernel, inv_s=1.0 / float(S),
                          tile=ts, total_s=S, needs_mask=needs_mask),
        out_shape=jax.ShapeDtypeStruct((B, C, 1), jnp.float32),
        grid=(B, ns),
        in_specs=[pl.BlockSpec((1, C, ts), lambda b, s: (b, 0, s)),
                  pl.BlockSpec((C, Cr), lambda b, s: (0, 0)),
                  pl.BlockSpec((Cr, C), lambda b, s: (0, 0))],
        out_specs=pl.BlockSpec((1, C, 1), lambda b, s: (b, 0, 0)),
        scratch_shapes=[pltpu.VMEM((1, C), jnp.float32),
                        pltpu.VMEM((1, C), jnp.float32)],
        compiler_params=pltpu.CompilerParams(
            dimension_semantics=("parallel", "arbitrary"),
            vmem_limit_bytes=vmem_limit),
    )(x3, w1, w2)


# ---------------------------------------------------------------------------
# Path B, kernel 2: per-channel scaling; attention is (B, C, 1) so the
# broadcast is a pure lane broadcast (VPU only).
# ---------------------------------------------------------------------------
def _scale_kernel(x_ref, att_ref, o_ref):
    o_ref[...] = (x_ref[...].astype(jnp.float32) * att_ref[...]).astype(o_ref.dtype)


def _apply_attention(x3, att, ts, vmem_limit):
    B, C, S = x3.shape
    ns = pl.cdiv(S, ts)
    # NOTE: if ts does not divide S, the last tile's out-of-bounds lanes are
    # dropped on writeback by Pallas (documented non-divisible-block behavior).
    return pl.pallas_call(
        _scale_kernel,
        out_shape=jax.ShapeDtypeStruct((B, C, S), x3.dtype),
        grid=(B, ns),
        in_specs=[pl.BlockSpec((1, C, ts), lambda b, s: (b, 0, s)),
                  pl.BlockSpec((1, C, 1), lambda b, s: (b, 0, 0))],
        out_specs=pl.BlockSpec((1, C, ts), lambda b, s: (b, 0, s)),
        compiler_params=pltpu.CompilerParams(
            dimension_semantics=("parallel", "parallel"),
            vmem_limit_bytes=vmem_limit),
    )(x3, att)


# ---------------------------------------------------------------------------
# Parameters + module forward
# ---------------------------------------------------------------------------
def build_params(key, in_channels, reduction=16):
    """fc1/fc2 weights, stored transposed: w1 = fc1.weight.T, w2 = fc2.weight.T."""
    cr = max(in_channels // reduction, 1)
    k1, k2 = jax.random.split(key)
    lim1 = in_channels ** -0.5
    lim2 = cr ** -0.5
    w1 = jax.random.uniform(k1, (in_channels, cr), jnp.float32, -lim1, lim1)
    w2 = jax.random.uniform(k2, (cr, in_channels), jnp.float32, -lim2, lim2)
    return {"w1": w1, "w2": w2}


def channel_attention_forward(params, x, *, force_streaming=False):
    """x: (B, C, D, H, W) -> (attended_features, attention_weights)."""
    if x.ndim != 5:
        raise ValueError(
            f"Expected input to be 5D (batch_size, channels, depth, height, "
            f"width), but got shape {x.shape}")
    B, C, D, H, W = x.shape
    S = D * H * W
    x3 = x.reshape(B, C, S)                              # free row-major view
    w1, w2 = params["w1"], params["w2"]
    vmem_limit = _vmem_limit_bytes()
    dsize = x.dtype.itemsize

    # Fully-fused gate: x + y (double-buffered) + f32 working copies + slack.
    fused_bytes = B * C * S * (4 * dsize + 8) + 2 * (1 << 20)
    if (not force_streaming) and fused_bytes <= vmem_limit:
        y3, att = _fused_forward(x3, w1, w2, vmem_limit)
    else:
        ts, needs_mask = _spatial_tile(C, S, dsize, vmem_limit)
        att = _pool_mlp(x3, w1, w2, ts, needs_mask, vmem_limit)   # (B, C, 1)
        y3 = _apply_attention(x3, att, ts, vmem_limit)            # (B, C, S)

    attended = y3.reshape(B, C, D, H, W)
    weights = att.reshape(B, C, 1, 1, 1).astype(x.dtype)
    return attended, weights


def _reference(params, x):
    """Pure-JAX reference for correctness checking."""
    B, C = x.shape[:2]
    avg = jnp.mean(x, axis=(2, 3, 4))
    mx = jnp.max(x, axis=(2, 3, 4))

    def mlp(v):
        return jnp.maximum(v @ params["w1"], 0.0) @ params["w2"]

    att = jax.nn.sigmoid(mlp(avg) + mlp(mx))
    return x * att[:, :, None, None, None], att.reshape(B, C, 1, 1, 1)


# ---------------------------------------------------------------------------
# Driver
# ---------------------------------------------------------------------------
if __name__ == "__main__":
    key = jax.random.PRNGKey(0)
    pkey, xkey = jax.random.split(key)

    B, C, D, H, W = 2, 64, 4, 16, 16          # in_channels=64, reduction=16
    params = build_params(pkey, C, reduction=16)
    x = jax.random.normal(xkey, (B, C, D, H, W), jnp.float32)

    ref_att, ref_w = _reference(params, x)

    # Fused (VMEM-resident) path.
    fwd = jax.jit(channel_attention_forward)
    attended, weights = jax.block_until_ready(fwd(params, x))
    assert attended.shape == (B, C, D, H, W), attended.shape
    assert weights.shape == (B, C, 1, 1, 1), weights.shape
    assert bool(jnp.all(jnp.isfinite(attended)))
    assert bool(jnp.all(jnp.isfinite(weights)))
    assert jnp.allclose(attended, ref_att, atol=1e-5, rtol=1e-5)
    assert jnp.allclose(weights, ref_w, atol=1e-5, rtol=1e-5)

    # Streaming (large-x) fallback path, forced at the same small shape.
    fwd_stream = jax.jit(
        functools.partial(channel_attention_forward, force_streaming=True))
    attended_s, weights_s = jax.block_until_ready(fwd_stream(params, x))
    assert jnp.allclose(attended_s, ref_att, atol=1e-5, rtol=1e-5)
    assert jnp.allclose(weights_s, ref_w, atol=1e-5, rtol=1e-5)

    print("KERNEL_OK")
</pallas_src>

<mosaic_0001>
module attributes {stable_mosaic.version = 11 : i64} {
  func.func @_fused_kernel(%arg0: i32, %arg1: memref<2x64x1024xf32, #tpu.memory_space<vmem>>, %arg2: memref<64x4xf32, #tpu.memory_space<vmem>>, %arg3: memref<4x64xf32, #tpu.memory_space<vmem>>, %arg4: memref<2x64x1024xf32, #tpu.memory_space<vmem>>, %arg5: memref<2x64x1xf32, #tpu.memory_space<vmem>>) attributes {dimension_semantics = [#tpu.dimension_semantics<arbitrary>], iteration_bounds = array<i64: 1>, scalar_prefetch = 0 : i64, scratch_operands = 0 : i64, tpu.core_type = #tpu.core_type<tc>, window_params = [{pipeline_mode = #tpu.pipeline_mode<synchronous>, transform_indices = @transform_0, window_bounds = array<i64: 2, 64, 1024>}, {pipeline_mode = #tpu.pipeline_mode<synchronous>, transform_indices = @transform_1, window_bounds = array<i64: 64, 4>}, {pipeline_mode = #tpu.pipeline_mode<synchronous>, transform_indices = @transform_2, window_bounds = array<i64: 4, 64>}, {pipeline_mode = #tpu.pipeline_mode<synchronous>, transform_indices = @transform_3, window_bounds = array<i64: 2, 64, 1024>}, {pipeline_mode = #tpu.pipeline_mode<synchronous>, transform_indices = @transform_4, window_bounds = array<i64: 2, 64, 1>}]} {
    %c0 = arith.constant 0 : index
    %c0_0 = arith.constant 0 : index
    %c0_1 = arith.constant 0 : index
    %0 = vector.load %arg1[%c0, %c0_0, %c0_1] : memref<2x64x1024xf32, #tpu.memory_space<vmem>>, vector<2x64x1024xf32>
    %cst = arith.constant dense<0.000000e+00> : vector<2x64xf32>
    %1 = vector.multi_reduction <add>, %0, %cst [2] : vector<2x64x1024xf32> to vector<2x64xf32>
    %cst_2 = arith.constant 9.765625E-4 : f32
    %2 = vector.broadcast %cst_2 : f32 to vector<2x64xf32>
    %3 = arith.mulf %1, %2 : vector<2x64xf32>
    %cst_3 = arith.constant dense<0xFF800000> : vector<2x64xf32>
    %4 = vector.multi_reduction <maximumf>, %0, %cst_3 [2] : vector<2x64x1024xf32> to vector<2x64xf32>
    %c0_4 = arith.constant 0 : index
    %c0_5 = arith.constant 0 : index
    %5 = vector.load %arg2[%c0_4, %c0_5] : memref<64x4xf32, #tpu.memory_space<vmem>>, vector<64x4xf32>
    %c0_6 = arith.constant 0 : index
    %c0_7 = arith.constant 0 : index
    %6 = vector.load %arg3[%c0_6, %c0_7] : memref<4x64xf32, #tpu.memory_space<vmem>>, vector<4x64xf32>
    %cst_8 = arith.constant dense<0.000000e+00> : vector<2x4xf32>
    %7 = tpu.matmul %3, %5, %cst_8 {dimension_numbers = #tpu.dot_dimension_numbers<[1], [0], [0], [1], [0, 0, 1, 1], [], []>} : vector<2x64xf32>, vector<64x4xf32>, vector<2x4xf32> -> vector<2x4xf32>
    %cst_9 = arith.constant 0.000000e+00 : f32
    %8 = vector.broadcast %cst_9 : f32 to vector<2x4xf32>
    %9 = arith.maximumf %7, %8 : vector<2x4xf32>
    %cst_10 = arith.constant dense<0.000000e+00> : vector<2x4xf32>
    %10 = tpu.matmul %4, %5, %cst_10 {dimension_numbers = #tpu.dot_dimension_numbers<[1], [0], [0], [1], [0, 0, 1, 1], [], []>} : vector<2x64xf32>, vector<64x4xf32>, vector<2x4xf32> -> vector<2x4xf32>
    %cst_11 = arith.constant 0.000000e+00 : f32
    %11 = vector.broadcast %cst_11 : f32 to vector<2x4xf32>
    %12 = arith.maximumf %10, %11 : vector<2x4xf32>
    %13 = arith.addf %9, %12 : vector<2x4xf32>
    %cst_12 = arith.constant dense<0.000000e+00> : vector<2x64xf32>
    %14 = tpu.matmul %13, %6, %cst_12 {dimension_numbers = #tpu.dot_dimension_numbers<[1], [0], [0], [1], [0, 0, 1, 1], [], []>} : vector<2x4xf32>, vector<4x64xf32>, vector<2x64xf32> -> vector<2x64xf32>
    %15 = arith.negf %14 : vector<2x64xf32>
    %16 = math.exp %15 : vector<2x64xf32>
    %cst_13 = arith.constant 1.000000e+00 : f32
    %17 = vector.broadcast %cst_13 : f32 to vector<2x64xf32>
    %18 = arith.addf %17, %16 : vector<2x64xf32>
    %19 = arith.divf %17, %18 : vector<2x64xf32>
    %20 = vector.shape_cast %19 : vector<2x64xf32> to vector<2x64x1xf32>
    %c0_14 = arith.constant 0 : index
    %c0_15 = arith.constant 0 : index
    %c0_16 = arith.constant 0 : index
    %21 = vector.load %arg5[%c0_14, %c0_15, %c0_16] : memref<2x64x1xf32, #tpu.memory_space<vmem>>, vector<2x64x1xf32>
    tpu.vector_store %arg5[%c0_14, %c0_15, %c0_16], %20 {strides = array<i32>} : memref<2x64x1xf32, #tpu.memory_space<vmem>>, vector<2x64x1xf32>,
    %22 = vector.shape_cast %19 : vector<2x64xf32> to vector<2x64x1xf32>
    %23 = vector.broadcast %22 : vector<2x64x1xf32> to vector<2x64x1024xf32>
    %24 = arith.mulf %0, %23 : vector<2x64x1024xf32>
    %c0_17 = arith.constant 0 : index
    %c0_18 = arith.constant 0 : index
    %c0_19 = arith.constant 0 : index
    %25 = vector.load %arg4[%c0_17, %c0_18, %c0_19] : memref<2x64x1024xf32, #tpu.memory_space<vmem>>, vector<2x64x1024xf32>
    tpu.vector_store %arg4[%c0_17, %c0_18, %c0_19], %24 {strides = array<i32>} : memref<2x64x1024xf32, #tpu.memory_space<vmem>>, vector<2x64x1024xf32>,
    return
  }
  func.func @transform_0(%arg0: i32) -> (i32, i32, i32) {
    %c0_i32 = arith.constant 0 : i32
    %c0_i32_0 = arith.constant 0 : i32
    %c0_i32_1 = arith.constant 0 : i32
    %c0_i32_2 = arith.constant 0 : i32
    return %c0_i32, %c0_i32_0, %c0_i32_1 : i32, i32, i32
  }
  func.func @transform_1(%arg0: i32) -> (i32, i32) {
    %c0_i32 = arith.constant 0 : i32
    %c0_i32_0 = arith.constant 0 : i32
    %c0_i32_1 = arith.constant 0 : i32
    return %c0_i32, %c0_i32_0 : i32, i32
  }
  func.func @transform_2(%arg0: i32) -> (i32, i32) {
    %c0_i32 = arith.constant 0 : i32
    %c0_i32_0 = arith.constant 0 : i32
    %c0_i32_1 = arith.constant 0 : i32
    return %c0_i32, %c0_i32_0 : i32, i32
  }
  func.func @transform_3(%arg0: i32) -> (i32, i32, i32) {
    %c0_i32 = arith.constant 0 : i32
    %c0_i32_0 = arith.constant 0 : i32
    %c0_i32_1 = arith.constant 0 : i32
    %c0_i32_2 = arith.constant 0 : i32
    return %c0_i32, %c0_i32_0, %c0_i32_1 : i32, i32, i32
  }
  func.func @transform_4(%arg0: i32) -> (i32, i32, i32) {
    %c0_i32 = arith.constant 0 : i32
    %c0_i32_0 = arith.constant 0 : i32
    %c0_i32_1 = arith.constant 0 : i32
    %c0_i32_2 = arith.constant 0 : i32
    return %c0_i32, %c0_i32_0, %c0_i32_1 : i32, i32, i32
  }
}

</mosaic_0001>

<bundles_post_ra>
// kernel: channel_attention_forward.1
= control target key start
LH: loop header
LB: loop body
LE: loop exit
PB: predicated region body
PF: predicated region fallthrough
CT: control target
= control target key end

     0   :  { %vm1426_vm0 = vmmov 0   ;;  %vm484_vm1 = vcmask 130112   ;;  %vm491_vm2 = vcmask 195712   ;;  %vm498_vm3 = vcmask 261312   ;;  %s3244_s0 = inlined_call_operand.vmem [shape: f32[2,64,1024], index: 0, kind: input, shape index: {}]   ;;  %s3245_s1 = inlined_call_operand.vmem [shape: f32[64,4], index: 1, kind: input, shape index: {}]   ;;  %s3246_s2 = inlined_call_operand.vmem [shape: f32[4,64], index: 2, kind: input, shape index: {}]   ;;  %s3247_s4 = inlined_call_operand.vmem [shape: f32[2,64,1], index: 4, kind: output, shape index: {1}]   ;;  %s3248_s3 = inlined_call_operand.vmem [shape: f32[2,64,1024], index: 3, kind: output, shape index: {0}]  }
   0x1   :  { %v80_v0 = vld [vmem:[%s3244_s0 + $0x200] sm:$0xff]  ;;  %v81_v1 = vld [vmem:[%s3244_s0 + $0x208] sm:$0xff]  ;;  %v82_v2 = vld [vmem:[%s3244_s0 + $0x210] sm:$0xff]  ;;  %vm505_vm4 = vcmask 326912   ;;  %vm512_vm5 = vcmask 392512   ;;  %vm519_vm6 = vcmask 458112  }
   0x2   :  { %v216_v3 = vadd.f32 %v81_v1, %v80_v0  ;;  %v376_v4 = vmax.f32 %v80_v0, %v81_v1  ;;  %v83_v5 = vld [vmem:[%s3244_s0 + $0x218] sm:$0xff]  ;;  %v16_v6 = vld [vmem:[%s3244_s0] sm:$0xff]  ;;  %v17_v8 = vld [vmem:[%s3244_s0 + $0x8] sm:$0xff]  ;;  %vm526_vm7 = vcmask 523712   ;;  %vm567_vm8 = vcmask 1041409  }
   0x3   :  { %v18_v9 = vld [vmem:[%s3244_s0 + $0x10] sm:$0xff]  ;;  %v84_v11 = vld [vmem:[%s3244_s0 + $0x220] sm:$0xff]  ;;  %v144_v12 = vadd.f32 %v17_v8, %v16_v6  ;;  %v304_v13 = vmax.f32 %v16_v6, %v17_v8  ;;  %v1479_v15 = vld [vmem:[%s3244_s0 + $0x18] sm:$0xff]  ;;  %vm569_vm9 = vcmask 523264   ;;  %vm816_vm10 = vcmask 1043456  }
   0x4   :  { %v217_v7 = vadd.f32 %v216_v3, %v82_v2  ;;  %v377_v10 = vmax.f32 %v376_v4, %v82_v2  ;;  %v88_v16 = vld [vmem:[%s3244_s0 + $0x240] sm:$0xff]  ;;  %v89_v17 = vld [vmem:[%s3244_s0 + $0x248] sm:$0xff]  ;;  %v90_v21 = vld [vmem:[%s3244_s0 + $0x250] sm:$0xff]  ;;  %vm812_vm11 = vcmask 31744   ;;  %vm966_vm12 = vcmask 7168  }
   0x5   :  { %v1490_v19 = vld [vmem:[%s3244_s0 + $0x228] sm:$0xff]  ;;  %v145_v20 = vadd.f32 %v144_v12, %v18_v9  ;;  %v225_v22 = vadd.f32 %v89_v17, %v88_v16  ;;  %v305_v23 = vmax.f32 %v304_v13, %v18_v9  ;;  %v385_v24 = vmax.f32 %v88_v16, %v89_v17  ;;  %v1498_v25 = vld [vmem:[%s3244_s0 + $0x230] sm:$0xff]  ;;  %v20_v27 = vld [vmem:[%s3244_s0 + $0x20] sm:$0xff] }
   0x6   :  { %v218_v14 = vadd.f32 %v217_v7, %v83_v5  ;;  %v378_v18 = vmax.f32 %v377_v10, %v83_v5  ;;  %v91_v28 = vld [vmem:[%s3244_s0 + $0x258] sm:$0xff]  ;;  %v24_v31 = vld [vmem:[%s3244_s0 + $0x40] sm:$0xff]  ;;  %v25_v32 = vld [vmem:[%s3244_s0 + $0x48] sm:$0xff] }
   0x7   :  { %v146_v29 = vadd.f32 %v145_v20, %v1479_v15  ;;  %v226_v30 = vadd.f32 %v225_v22, %v90_v21  ;;  %v26_v33 = vld [vmem:[%s3244_s0 + $0x50] sm:$0xff]  ;;  %v386_v34 = vmax.f32 %v385_v24, %v90_v21  ;;  %v1519_v35 = vld [vmem:[%s3244_s0 + $0x238] sm:$0xff]  ;;  %v1525_v37 = vld [vmem:[%s3244_s0 + $0x28] sm:$0xff]  ;;  %v153_v39 = vadd.f32 %v25_v32, %v24_v31 }
   0x8   :  { %v219_v26 = vadd.f32 %v218_v14, %v84_v11  ;;  %v92_v38 = vld [vmem:[%s3244_s0 + $0x260] sm:$0xff]  ;;  %v313_v40 = vmax.f32 %v24_v31, %v25_v32  ;;  %v1533_v41 = vld [vmem:[%s3244_s0 + $0x30] sm:$0xff]  ;;  %v27_v44 = vld [vmem:[%s3244_s0 + $0x58] sm:$0xff]  ;;  %v306_v46 = vmax.f32 %v305_v23, %v1479_v15  ;;  %v379_v47 = vmax.f32 %v378_v18, %v84_v11 }
   0x9   :  { %v147_v42 = vadd.f32 %v146_v29, %v20_v27  ;;  %v227_v43 = vadd.f32 %v226_v30, %v91_v28  ;;  %v1541_v45 = vld [vmem:[%s3244_s0 + $0x280] sm:$0xff]  ;;  %v1548_v49 = vld [vmem:[%s3244_s0 + $0x268] sm:$0xff]  ;;  %v154_v50 = vadd.f32 %v153_v39, %v26_v33  ;;  %v1558_v52 = vld [vmem:[%s3244_s0 + $0x290] sm:$0xff]  ;;  %v387_v54 = vmax.f32 %v386_v34, %v91_v28 }
   0xa   :  { %v220_v36 = vadd.f32 %v219_v26, %v1490_v19  ;;  %v1553_v51 = vld [vmem:[%s3244_s0 + $0x288] sm:$0xff]  ;;  %v314_v53 = vmax.f32 %v313_v40, %v26_v33  ;;  %v1563_v55 = vld [vmem:[%s3244_s0 + $0x38] sm:$0xff]  ;;  %v1569_v57 = vld [vmem:[%s3244_s0 + $0x270] sm:$0xff]  ;;  %v1627_v14 = vmax.f32 %v306_v46, %v20_v27  ;;  %v380_v16 = vmax.f32 %v379_v47, %v1490_v19 }
   0xb   :  { %v148_v56 = vadd.f32 %v147_v42, %v1525_v37  ;;  %v228_v58 = vadd.f32 %v227_v43, %v92_v38  ;;  %v28_v59 = vld [vmem:[%s3244_s0 + $0x60] sm:$0xff]  ;;  %v234_v60 = vadd.f32 %v1553_v51, %v1541_v45  ;;  %v155_v62 = vadd.f32 %v154_v50, %v27_v44  ;;  %v1580_v63 = vld [vmem:[%s3244_s0 + $0x298] sm:$0xff]  ;;  %v1590_v1 = vld [vmem:[%s3244_s0 + $0x88] sm:$0xff] }
   0xc   :  { %v221_v48 = vadd.f32 %v220_v36, %v1498_v25  ;;  %v1585_v0 = vld [vmem:[%s3244_s0 + $0x80] sm:$0xff]  ;;  %v315_v2 = vmax.f32 %v314_v53, %v27_v44  ;;  %v1596_v4 = vld [vmem:[%s3244_s0 + $0x278] sm:$0xff]  ;;  %v1602_v6 = vld [vmem:[%s3244_s0 + $0x68] sm:$0xff]  ;;  %v1629_v15 = vmax.f32 %v387_v54, %v92_v38  ;;  %v308_v46 = vmax.f32 %v1627_v14, %v1525_v37 }
   0xd   :  { %v149_v3 = vadd.f32 %v148_v56, %v1533_v41  ;;  %v229_v5 = vadd.f32 %v228_v58, %v1548_v49  ;;  %v235_v7 = vadd.f32 %v234_v60, %v1558_v52  ;;  %v1608_v8 = vld [vmem:[%s3244_s0 + $0x90] sm:$0xff]  ;;  %v162_v9 = vadd.f32 %v1590_v1, %v1585_v0  ;;  %v1620_v12 = vld [vmem:[%s3244_s0 + $0x2a0] sm:$0xff]  ;;  %v1625_v13 = vld [vmem:[%s3244_s0 + $0x98] sm:$0xff] }
   0xe   :  { %v222_v61 = vadd.f32 %v221_v48, %v1519_v35  ;;  %v1615_v10 = vld [vmem:[%s3244_s0 + $0x70] sm:$0xff]  ;;  %v156_v11 = vadd.f32 %v155_v62, %v28_v59  ;;  %v1639_v22 = vld [vmem:[%s3244_s0 + $0x2c0] sm:$0xff]  ;;  %v1644_v23 = vld [vmem:[%s3244_s0 + $0x2c8] sm:$0xff]  ;;  %v1669_v30 = vmax.f32 %v315_v2, %v28_v59  ;;  %v1709_v47 = vmax.f32 %v380_v16, %v1498_v25 }
   0xf   :  { %v150_v17 = vadd.f32 %v149_v3, %v1563_v55  ;;  %v230_v18 = vadd.f32 %v229_v5, %v1569_v57  ;;  %v236_v20 = vadd.f32 %v235_v7, %v1580_v63  ;;  %v163_v21 = vadd.f32 %v162_v9, %v1608_v8  ;;  %v1649_v19 = vld [vmem:[%s3244_s0 + $0x2d0] sm:$0xff]  ;;  %v1654_v24 = vld [vmem:[%s3244_s0 + $0x78] sm:$0xff]  ;;  %v1660_v27 = vld [vmem:[%s3244_s0 + $0x2a8] sm:$0xff] }
  0x10   :  { %223 = vadd.xlane.f32.xlu1 %v222_v61  ;;  %v157_v26 = vadd.f32 %v156_v11, %v1602_v6  ;;  %v1665_v28 = vld [vmem:[%s3244_s0 + $0xa0] sm:$0xff]  ;;  %v243_v29 = vadd.f32 %v1644_v23, %v1639_v22  ;;  %v1675_v32 = vld [vmem:[%s3244_s0 + $0x2b0] sm:$0xff]  ;;  %v1682_v36 = vld [vmem:[%s3244_s0 + $0x2d8] sm:$0xff]  ;;  %v389_v58 = vmax.f32 %v1629_v15, %v1548_v49  ;;  %v317_v62 = vmax.f32 %v1669_v30, %v1602_v6 }
  0x11   :  { %151 = vadd.xlane.f32.xlu0 %v150_v17  ;;  %v231_v31 = vadd.f32 %v230_v18, %v1596_v4  ;;  %v237_v33 = vadd.f32 %v236_v20, %v1620_v12  ;;  %v164_v34 = vadd.f32 %v163_v21, %v1625_v13  ;;  %v1687_v38 = vld [vmem:[%s3244_s0 + $0xc0] sm:$0xff]  ;;  %v1693_v40 = vld [vmem:[%s3244_s0 + $0xa8] sm:$0xff]  ;;  %v1704_v44 = vld [vmem:[%s3244_s0 + $0xd0] sm:$0xff]  ;;  %v394_v3 = vmax.f32 %v1541_v45, %v1553_v51 }
  0x12   :  { %v158_v39 = vadd.f32 %v157_v26, %v1615_v10  ;;  %v244_v42 = vadd.f32 %v243_v29, %v1649_v19  ;;  %v1699_v43 = vld [vmem:[%s3244_s0 + $0xc8] sm:$0xff]  ;;  %v1714_v48 = vld [vmem:[%s3244_s0 + $0x2b8] sm:$0xff]  ;;  %v1720_v53 = vld [vmem:[%s3244_s0 + $0xb0] sm:$0xff]  ;;  %v322_v21 = vmax.f32 %v1585_v0, %v1590_v1  ;;  %v403_v26 = vmax.f32 %v1639_v22, %v1644_v23 }
  0x13   :  { %v238_v50 = vadd.f32 %v237_v33, %v1660_v27  ;;  %v165_v54 = vadd.f32 %v164_v34, %v1665_v28  ;;  %v1726_v25 = vld [vmem:[%s3244_s0 + $0x2e0] sm:$0xff]  ;;  %v171_v56 = vadd.f32 %v1699_v43, %v1687_v38  ;;  %v1737_v61 = vld [vmem:[%s3244_s0 + $0xd8] sm:$0xff]  ;;  %v1749_v49 = vld [vmem:[%s3244_s0 + $0x308] sm:$0xff]  ;;  %v395_v20 = vmax.f32 %v394_v3, %v1558_v52 }
  0x14   :  { %232 = vadd.xlane.f32.xlu1 %v231_v31  ;;  %v159_v59 = vadd.f32 %v158_v39, %v1654_v24  ;;  %v245_v60 = vadd.f32 %v244_v42, %v1682_v36  ;;  %v1744_v2 = vld [vmem:[%s3244_s0 + $0x300] sm:$0xff]  ;;  %v1757_v7 = vld [vmem:[%s3244_s0 + $0xb8] sm:$0xff]  ;;  %v1763_v9 = vld [vmem:[%s3244_s0 + $0x2e8] sm:$0xff]  ;;  %v318_v3 = vmax.f32 %v317_v62, %v1615_v10 }
  0x15   :  { %v239_v5 = vadd.f32 %v238_v50, %v1675_v32  ;;  %v166_v6 = vadd.f32 %v165_v54, %v1693_v40  ;;  %v172_v11 = vadd.f32 %v171_v56, %v1704_v44  ;;  %v1769_v45 = vld [vmem:[%s3244_s0 + $0x310] sm:$0xff]  ;;  %v252_v51 = vadd.f32 %v1749_v49, %v1744_v2  ;;  %v1782_v17 = vld [vmem:[%s3244_s0 + $0xe0] sm:$0xff]  ;;  %v1787_v18 = vld [vmem:[%s3244_s0 + $0x318] sm:$0xff] }
  0x16   :  { %160 = vadd.xlane.f32.xlu0 %v159_v59  ;;  %v1776_v15 = vld [vmem:[%s3244_s0 + $0x2f0] sm:$0xff]  ;;  %v246_v16 = vadd.f32 %v245_v60, %v1726_v25  ;;  %v1801_v34 = vld [vmem:[%s3244_s0 + $0x100] sm:$0xff]  ;;  %v1806_v52 = vld [vmem:[%s3244_s0 + $0x108] sm:$0xff]  ;;  %v396_v50 = vmax.f32 %v395_v20, %v1580_v63  ;;  %v323_v54 = vmax.f32 %v322_v21, %v1608_v8  ;;  %v404_v20 = vmax.f32 %v403_v26, %v1649_v19 }
  0x17   :  { %v240_v29 = vadd.f32 %v239_v5, %v1714_v48  ;;  %v167_v30 = vadd.f32 %v166_v6, %v1720_v53  ;;  %v173_v31 = vadd.f32 %v172_v11, %v1737_v61  ;;  %v253_v33 = vadd.f32 %v252_v51, %v1769_v45  ;;  %v1811_v0 = vld [vmem:[%s3244_s0 + $0x110] sm:$0xff]  ;;  %v1816_v1 = vld [vmem:[%s3244_s0 + $0x2f8] sm:$0xff]  ;;  %v1822_v23 = vld [vmem:[%s3244_s0 + $0xe8] sm:$0xff] }
  0x18   :  { %v247_v22 = vadd.f32 %v246_v16, %v1763_v9  ;;  %v1827_v39 = vld [vmem:[%s3244_s0 + $0x320] sm:$0xff]  ;;  %v180_v42 = vadd.f32 %v1806_v52, %v1801_v34  ;;  %v1837_v59 = vld [vmem:[%s3244_s0 + $0xf0] sm:$0xff]  ;;  %v1845_v63 = vld [vmem:[%s3244_s0 + $0x118] sm:$0xff]  ;;  %v397_v62 = vmax.f32 %v396_v50, %v1620_v12 }
  0x19   :  { %241 = vadd.xlane.f32.xlu1 %v240_v29  ;;  %v168_v56 = vadd.f32 %v167_v30, %v1757_v7  ;;  %v174_v60 = vadd.f32 %v173_v31, %v1782_v17  ;;  %v254_v5 = vadd.f32 %v253_v33, %v1787_v18  ;;  %v1850_v8 = vld [vmem:[%s3244_s0 + $0x340] sm:$0xff]  ;;  %v1856_v11 = vld [vmem:[%s3244_s0 + $0x328] sm:$0xff]  ;;  %v1868_v16 = vld [vmem:[%s3244_s0 + $0x350] sm:$0xff]  ;;  %v324_v31 = vmax.f32 %v323_v54, %v1625_v13 }
  0x1a   :  { %v248_v6 = vadd.f32 %v247_v22, %v1776_v15  ;;  %v181_v10 = vadd.f32 %v180_v42, %v1811_v0  ;;  %v1863_v51 = vld [vmem:[%s3244_s0 + $0x348] sm:$0xff]  ;;  %v1874_v21 = vld [vmem:[%s3244_s0 + $0xf8] sm:$0xff]  ;;  %v1881_v30 = vld [vmem:[%s3244_s0 + $0x120] sm:$0xff]  ;;  %v309_v33 = vmax.f32 %v308_v46, %v1533_v41  ;;  %v1892_v22 = vmax.f32 %v389_v58, %v1569_v57 }
  0x1b   :  { %169 = vadd.xlane.f32.xlu0 %v168_v56  ;;  %v175_v12 = vadd.f32 %v174_v60, %v1822_v23  ;;  %v255_v29 = vadd.f32 %v254_v5, %v1827_v39  ;;  %v261_v19 = vadd.f32 %v1863_v51, %v1850_v8  ;;  %v1898_v50 = vld [vmem:[%s3244_s0 + $0x358] sm:$0xff]  ;;  %v1903_v13 = vld [vmem:[%s3244_s0 + $0x140] sm:$0xff]  ;;  %v1908_v37 = vld [vmem:[%s3244_s0 + $0x148] sm:$0xff]  ;;  %v319_v60 = vmax.f32 %v318_v3, %v1654_v24 }
  0x1c   :  { %v249_v26 = vadd.f32 %v248_v6, %v1816_v1  ;;  %v182_v42 = vadd.f32 %v181_v10, %v1845_v63  ;;  %v1914_v57 = vld [vmem:[%s3244_s0 + $0x330] sm:$0xff]  ;;  %v1920_v46 = vld [vmem:[%s3244_s0 + $0x128] sm:$0xff]  ;;  %v189_v56 = vadd.f32 %v1908_v37, %v1903_v13  ;;  %v398_v6 = vmax.f32 %v397_v62, %v1660_v27  ;;  %v1936_v10 = vld [vmem:[%s3244_s0 + $0x360] sm:$0xff] }
  0x1d   :  { %v176_v41 = vadd.f32 %v175_v12, %v1837_v59  ;;  %3258 = vst [vmem:[#allocation2_spill] sm:$0xff] %v1914_v57  ;;  %v256_v14 = vadd.f32 %v255_v29, %v1856_v11  ;;  %v262_v58 = vadd.f32 %v261_v19, %v1868_v16  ;;  %v1926_v54 = vld [vmem:[%s3244_s0 + $0x150] sm:$0xff]  ;;  %3259 = vst [vmem:[#allocation3_spill] sm:$0xff] %v1936_v10  ;;  %v1941_v12 = vld [vmem:[%s3244_s0 + $0x158] sm:$0xff] }
  0x1e   :  { %250 = vadd.xlane.f32.xlu1 %v249_v26  ;;  %v183_v5 = vadd.f32 %v182_v42, %v1881_v30  ;;  %v405_v29 = vmax.f32 %v404_v20, %v1682_v36  ;;  %v1946_v24 = vmax.f32 %v324_v31, %v1665_v28  ;;  %v190_v27 = vadd.f32 %v189_v56, %v1926_v54  ;;  %v1953_v62 = vld [vmem:[%s3244_s0 + $0x380] sm:$0xff]  ;;  %v1958_v26 = vld [vmem:[%s3244_s0 + $0x388] sm:$0xff]  ;;  %v1963_v36 = vld [vmem:[%s3244_s0 + $0x338] sm:$0xff] }
  0x1f   :  { %v177_v19 = vadd.f32 %v176_v41, %v1874_v21  ;;  %v263_v3 = vadd.f32 %v262_v58, %v1898_v50  ;;  %v257_v28 = vadd.f32 %v256_v14, %v1914_v57  ;;  %v1969_v20 = vld [vmem:[%s3244_s0 + $0x130] sm:$0xff]  ;;  %v310_v42 = vmax.f32 %v309_v33, %v1563_v55  ;;  %v1976_v41 = vld [vmem:[%s3244_s0 + $0x368] sm:$0xff]  ;;  %v1990_v55 = vld [vmem:[%s3244_s0 + $0x180] sm:$0xff] }
  0x20   :  { %v184_v31 = vadd.f32 %v183_v5, %v1920_v46  ;;  %3260 = vst [vmem:[#allocation4_spill] sm:$0xff] %v1976_v41  ;;  %v191_v56 = vadd.f32 %v190_v27, %v1941_v12  ;;  %v331_v14 = vmax.f32 %v1687_v38, %v1699_v43  ;;  %v1985_v57 = vld [vmem:[%s3244_s0 + $0x390] sm:$0xff]  ;;  %v391_v33 = vmax.f32 %v1892_v22, %v1596_v4  ;;  %v2002_v38 = vld [vmem:[%s3244_s0 + $0x160] sm:$0xff]  ;;  %v2023_v22 = vld [vmem:[%s3244_s0 + $0x398] sm:$0xff] }
  0x21   :  { %178 = vadd.xlane.f32.xlu0 %v177_v19  ;;  %v264_v58 = vadd.f32 %v263_v3, %v1936_v10  ;;  %v382_v5 = vmax.f32 %v1709_v47, %v1519_v35  ;;  %v1997_v19 = vmax.f32 %v398_v6, %v1675_v32  ;;  %3261 = vst [vmem:[#allocation5_spill] sm:$0xff] %v2002_v38  ;;  %v2014_v35 = vld [vmem:[%s3244_s0 + $0x190] sm:$0xff] }
  0x22   :  { %320 = vmax.xlane.f32.xlu1 %v319_v60  ;;  %v270_v43 = vadd.f32 %v1958_v26, %v1953_v62  ;;  %v2009_v60 = vld [vmem:[%s3244_s0 + $0x188] sm:$0xff]  ;;  %v326_v4 = vmax.f32 %v1946_v24, %v1693_v40  ;;  %v406_v32 = vmax.f32 %v405_v29, %v1726_v25  ;;  %v332_v47 = vmax.f32 %v331_v14, %v1704_v44  ;;  %v2033_v40 = vld [vmem:[%s3244_s0 + $0x198] sm:$0xff]  ;;  %v2040_v25 = vld [vmem:[%s3244_s0 + $0x3c0] sm:$0xff] }
  0x23   :  { %v198_v6 = vadd.f32 %v2009_v60, %v1990_v55  ;;  %v258_v3 = vadd.f32 %v257_v28, %v1963_v36  ;;  %v185_v27 = vadd.f32 %v184_v31, %v1969_v20  ;;  %v412_v44 = vmax.f32 %v1744_v2, %v1749_v49  ;;  %v2045_v29 = vld [vmem:[%s3244_s0 + $0x3c8] sm:$0xff]  ;;  %v2053_v2 = vld [vmem:[%s3244_s0 + $0x3a0] sm:$0xff]  ;;  %v2059_v14 = vld [vmem:[%s3244_s0 + $0x138] sm:$0xff] }
  0x24   :  { %v271_v10 = vadd.f32 %v270_v43, %v1985_v57  ;;  %v265_v24 = vadd.f32 %v264_v58, %v1976_v41  ;;  %v192_v28 = vadd.f32 %v191_v56, %v2002_v38  ;;  %v333_v31 = vmax.f32 %v332_v47, %v1737_v61  ;;  %v2069_v61 = vld [vmem:[%s3244_s0 + $0x168] sm:$0xff]  ;;  %v2083_v38 = vld [vmem:[%s3244_s0 + $0x3d0] sm:$0xff] }
  0x25   :  { %311 = vmax.xlane.f32.xlu0 %v310_v42  ;;  %v199_v49 = vadd.f32 %v198_v6, %v2014_v35  ;;  %v2064_v42 = vld [vmem:[%s3244_s0 + $0x370] sm:$0xff]  ;;  %v413_v56 = vmax.f32 %v412_v44, %v1769_v45  ;;  %v279_v43 = vadd.f32 %v2045_v29, %v2040_v25  ;;  %v407_v47 = vmax.f32 %v406_v32, %v1763_v9  ;;  %v2088_v45 = vld [vmem:[%s3244_s0 + $0x1c0] sm:$0xff] }
  0x26   :  { %392 = vmax.xlane.f32.xlu1 %v391_v33  ;;  %v272_v58 = vadd.f32 %v271_v10, %v2023_v22  ;;  %v340_v33 = vmax.f32 %v1801_v34, %v1806_v52  ;;  %v334_v6 = vmax.f32 %v333_v31, %v1782_v17  ;;  %v2093_v34 = vld [vmem:[%s3244_s0 + $0x1c8] sm:$0xff]  ;;  %v2099_v17 = vld [vmem:[%s3244_s0 + $0x1a0] sm:$0xff]  ;;  %v186_v32 = vadd.f32 %v185_v27, %v2059_v14 }
  0x27   :  { %v200_v41 = vadd.f32 %v199_v49, %v2033_v40  ;;  %v414_v52 = vmax.f32 %v413_v56, %v1787_v18  ;;  %v327_v44 = vmax.f32 %v326_v4, %v1720_v53  ;;  %v193_v31 = vadd.f32 %v192_v28, %v2069_v61  ;;  %v2109_v49 = vld [vmem:[%s3244_s0 + $0x3a8] sm:$0xff]  ;;  %v2119_v53 = vld [vmem:[%s3244_s0 + $0x170] sm:$0xff] }
  0x28   :  { %v273_v9 = vadd.f32 %v272_v58, %v2053_v2  ;;  %v341_v10 = vmax.f32 %v340_v33, %v1811_v0  ;;  %v207_v58 = vadd.f32 %v2093_v34, %v2088_v45  ;;  %v400_v18 = vmax.f32 %v1997_v19, %v1714_v48  ;;  %v2125_v4 = vld [vmem:[%s3244_s0 + $0x1d0] sm:$0xff]  ;;  %v2146_v33 = vld [vmem:[%s3244_s0 + $0x1a8] sm:$0xff] }
  0x29   :  { %383 = vmax.xlane.f32.xlu0 %v382_v5  ;;  %v266_v0 = vadd.f32 %v265_v24, %v2064_v42  ;;  %v280_v5 = vadd.f32 %v279_v43, %v2083_v38  ;;  %v408_v48 = vmax.f32 %v407_v47, %v1776_v15  ;;  %v335_v19 = vmax.f32 %v334_v6, %v1822_v23  ;;  %v2138_v24 = vld [vmem:[%s3244_s0 + $0x3d8] sm:$0xff] }
  0x2a   :  { %259 = vadd.xlane.f32.xlu1 %v258_v3  ;;  %v2130_v3 = vld [vmem:[%s3244_s0 + $0x378] sm:$0xff]  ;;  %v201_v27 = vadd.f32 %v200_v41, %v2099_v17  ;;  %v421_v28 = vmax.f32 %v1850_v8, %v1863_v51  ;;  %v274_v56 = vadd.f32 %v273_v9, %v2109_v49  ;;  %v415_v15 = vmax.f32 %v414_v52, %v1827_v39  ;;  %v2155_v8 = vld [vmem:[%s3244_s0 + $0x3b0] sm:$0xff] }
  0x2b   :  { %v342_v23 = vmax.f32 %v341_v10, %v1845_v63  ;;  %v328_v41 = vmax.f32 %v327_v44, %v1757_v7  ;;  %v194_v43 = vadd.f32 %v193_v31, %v2119_v53  ;;  %v208_v51 = vadd.f32 %v207_v58, %v2125_v4  ;;  %v2162_v39 = vld [vmem:[%s3244_s0 + $0x178] sm:$0xff]  ;;  %v2177_v44 = vld [vmem:[%s3244_s0 + $0x3e0] sm:$0xff] }
  0x2c   :  { %v267_v47 = vadd.f32 %v266_v0, %v2130_v3  ;;  %v281_v6 = vadd.f32 %v280_v5, %v2138_v24  ;;  %v2168_v7 = vld [vmem:[%s3244_s0 + $0x1d8] sm:$0xff]  ;;  %v422_v9 = vmax.f32 %v421_v28, %v1868_v16  ;;  %v409_v52 = vmax.f32 %v408_v48, %v1816_v1  ;;  %v2205_v5 = vld [vmem:[%s3244_s0 + $0x1e0] sm:$0xff]  ;;  %v2215_v28 = vld [vmem:[%s3244_s0 + $0x3e8] sm:$0xff] }
  0x2d   :  { %187 = vadd.xlane.f32.xlu0 %v186_v32  ;;  %v336_v10 = vmax.f32 %v335_v19, %v1837_v59  ;;  %v202_v32 = vadd.f32 %v201_v27, %v2146_v33  ;;  %v349_v31 = vmax.f32 %v1903_v13, %v1908_v37  ;;  %v275_v58 = vadd.f32 %v274_v56, %v2155_v8  ;;  %v2190_v0 = vld [vmem:[%s3244_s0 + $0x3b8] sm:$0xff]  ;;  %v2195_v13 = vld [vmem:[%s3244_s0 + $0x1b0] sm:$0xff] }
  0x2e   :  { %401 = vmax.xlane.f32.xlu1 %v400_v18  ;;  %v416_v18 = vmax.f32 %v415_v15, %v1856_v11  ;;  %v343_v16 = vmax.f32 %v342_v23, %v1881_v30  ;;  %v430_v1 = vmax.f32 %v1953_v62, %v1958_v26  ;;  %v195_v59 = vadd.f32 %v194_v43, %v2162_v39  ;;  %v3263_v23 = vld [vmem:[#allocation2_spill] sm:$0xff] }
  0x2f   :  { %v209_v11 = vadd.f32 %v208_v51, %v2168_v7  ;;  %v350_v37 = vmax.f32 %v349_v31, %v1926_v54  ;;  %v358_v62 = vmax.f32 %v1990_v55, %v2009_v60  ;;  %v282_v26 = vadd.f32 %v281_v6, %v2177_v44  ;;  %3262 = vst [vmem:[#allocation6_spill] sm:$0xff] %v2205_v5  ;;  %v3265_v6 = vld [vmem:[#allocation3_spill] sm:$0xff] }
  0x30   :  { %v423_v48 = vmax.f32 %v422_v9, %v1898_v50  ;;  %v431_v19 = vmax.f32 %v430_v1, %v1985_v57  ;;  %v439_v27 = vmax.f32 %v2040_v25, %v2045_v29  ;;  %v337_v54 = vmax.f32 %v336_v10, %v1874_v21  ;;  %v2224_v57 = vld [vmem:[%s3244_s0 + $0x1b8] sm:$0xff] }
  0x31   :  { %329 = vmax.xlane.f32.xlu0 %v328_v41  ;;  %v276_v56 = vadd.f32 %v275_v58, %v2190_v0  ;;  %v203_v15 = vadd.f32 %v202_v32, %v2195_v13  ;;  %v417_v41 = vmax.f32 %v416_v18, %v3263_v23  ;;  %v344_v50 = vmax.f32 %v343_v16, %v1920_v46  ;;  %v3266_v16 = vld [vmem:[#allocation5_spill] sm:$0xff] }
  0x32   :  { %268 = vadd.xlane.f32.xlu1 %v267_v47  ;;  %v210_v21 = vadd.f32 %v209_v11, %v2205_v5  ;;  %v351_v25 = vmax.f32 %v350_v37, %v1941_v12  ;;  %v359_v29 = vmax.f32 %v358_v62, %v2014_v35  ;;  %v367_v43 = vmax.f32 %v2088_v45, %v2093_v34  ;;  %v2235_v47 = vld [vmem:[%s3244_s0 + $0x1e8] sm:$0xff]  ;;  %v142_v12 = vld [vmem:[%s3244_s0 + $0x3f0] sm:$0xff] }
  0x33   :  { %v283_v51 = vadd.f32 %v282_v26, %v2215_v28  ;;  %3264 = vst [vmem:[#allocation2_spill] sm:$0xff] %v2235_v47  ;;  %v424_v9 = vmax.f32 %v423_v48, %v3265_v6  ;;  %v432_v10 = vmax.f32 %v431_v19, %v2023_v22  ;;  %v440_v32 = vmax.f32 %v439_v27, %v2083_v38  ;;  %v2253_v11 = vld [vmem:[%s3244_s0 + $0x1f0] sm:$0xff]  ;;  %v143_v48 = vld [vmem:[%s3244_s0 + $0x3f8] sm:$0xff] }
  0x34   :  { %v204_v31 = vadd.f32 %v203_v15, %v2224_v57  ;;  %v345_v58 = vmax.f32 %v344_v50, %v1969_v20  ;;  %v211_v18 = vadd.f32 %v210_v21, %v2235_v47  ;;  %v352_v1 = vmax.f32 %v351_v25, %v3266_v16  ;;  %3267 = vst [vmem:[#allocation3_spill] sm:$0xff] %v2253_v11  ;;  %v3268_v37 = vld [vmem:[#allocation4_spill] sm:$0xff]  ;;  %v451_v16 = vld [vmem:[%s3245_s1 + $0x18] sm:$0xff] }
  0x35   :  { %196 = vadd.xlane.f32.xlu0 %v195_v59  ;;  %v360_v59 = vmax.f32 %v359_v29, %v2033_v40  ;;  %v368_v22 = vmax.f32 %v367_v43, %v2125_v4  ;;  %v284_v38 = vadd.f32 %v283_v51, %v142_v12  ;;  %v433_v62 = vmax.f32 %v432_v10, %v2053_v2  ;;  %v2269_v2 = vld [vmem:[%s3244_s0 + $0x1f8] sm:$0xff] }
  0x36   :  { %410 = vmax.xlane.f32.xlu1 %v409_v52  ;;  %v418_v52 = vmax.f32 %v417_v41, %v1963_v36  ;;  %v425_v36 = vmax.f32 %v424_v9, %v3268_v37  ;;  %v441_v26 = vmax.f32 %v440_v32, %v2138_v24  ;;  %v346_v19 = vmax.f32 %v345_v58, %v2059_v14  ;;  %v455_v32 = vld [vmem:[%s3245_s1 + $0x38] sm:$0xff]  ;;  %v452_v58 = vld [vmem:[%s3245_s1 + $0x20] sm:$0xff] }
  0x37   :  { %v212_v27 = vadd.f32 %v211_v18, %v2253_v11  ;;  %v369_v15 = vmax.f32 %v368_v22, %v2168_v7  ;;  %v285_v23 = vadd.f32 %v284_v38, %v143_v48  ;;  %3269 = vst [vmem:[#allocation5_spill] sm:$0xff] %v2269_v2  ;;  %v434_v41 = vmax.f32 %v433_v62, %v2109_v49  ;;  %v448_v22 = vld [vmem:[%s3245_s1] sm:$0xff] }
  0x38   :  { %v426_v24 = vmax.f32 %v425_v36, %v2064_v42  ;;  %v442_v50 = vmax.f32 %v441_v26, %v2177_v44  ;;  %v3253_v10 = vmov 0.0  }
  0x39   :  { %338 = vmax.xlane.f32.xlu0 %v337_v54  ;;  %v353_v54 = vmax.f32 %v352_v1, %v2069_v61  ;;  %v213_v21 = vadd.f32 %v212_v27, %v2269_v2  ;;  %v370_v43 = vmax.f32 %v369_v15, %v2205_v5  ;;  %v435_v6 = vmax.f32 %v434_v41, %v2155_v8  ;;  %v450_v1 = vld [vmem:[%s3245_s1 + $0x10] sm:$0xff] }
  0x3a   :  { %277 = vadd.xlane.f32.xlu1 %v276_v56  ;;  %v361_v56 = vmax.f32 %v360_v59, %v2099_v17  ;;  %v427_v51 = vmax.f32 %v426_v24, %v2130_v3  ;;  %v443_v42 = vmax.f32 %v442_v50, %v2215_v28  ;;  %1272 = vmatprep.subr.mxu0 %v3253_v10  ;;  %v454_v28 = vld [vmem:[%s3245_s1 + $0x30] sm:$0xff]  ;;  %v449_v59 = vld [vmem:[%s3245_s1 + $0x8] sm:$0xff] }
  0x3b   :  { %v354_v25 = vmax.f32 %v353_v54, %v2119_v53  ;;  %v371_v9 = vmax.f32 %v370_v43, %v2235_v47  ;;  %v436_v3 = vmax.f32 %v435_v6, %v2190_v0  ;;  %1273 = vmatpush3.msra.mxu0 %v455_v32  ;;  %1291 = vmatprep.subr.mxu1 %v3253_v10  ;;  %v453_v0 = vld [vmem:[%s3245_s1 + $0x28] sm:$0xff] }
  0x3c   :  { %v362_v29 = vmax.f32 %v361_v56, %v2146_v33  ;;  %v444_v8 = vmax.f32 %v443_v42, %v142_v12  ;;  %1274 = vmatprep.subr.mxu0 %v3253_v10  ;;  %1292 = vmatpush3.msra.mxu1 %v455_v32 }
  0x3d   :  { %205 = vadd.xlane.f32.xlu0 %v204_v31  ;;  %v355_v49 = vmax.f32 %v354_v25, %v2162_v39  ;;  %1275 = vmatpush3.msra.mxu0 %v454_v28 }
  0x3e   :  { %419 = vmax.xlane.f32.xlu1 %v418_v52  ;;  %v363_v44 = vmax.f32 %v362_v29, %v2195_v13  ;;  %v372_v52 = vmax.f32 %v371_v9, %v2253_v11  ;;  %1276 = vmatprep.subr.mxu0 %v3253_v10  ;;  %v445_v12 = vmax.f32 %v444_v8, %v143_v48 }
  0x3f   :  { %1277 = vmatpush3.msra.mxu0 %v453_v0  ;;  %1293 = vmatprep.subr.mxu1 %v3253_v10 }
  0x40   :  { %v364_v31 = vmax.f32 %v363_v44, %v2224_v57  ;;  %1278 = vmatprep.subr.mxu0 %v3253_v10  ;;  %1294 = vmatpush3.msra.mxu1 %v454_v28  ;;  %v373_v18 = vmax.f32 %v372_v52, %v2269_v2 }
  0x41   :  { %347 = vmax.xlane.f32.xlu0 %v346_v19  ;;  %1279 = vmatpush3.msra.mxu0 %v452_v58 }
  0x42   :  { %286 = vadd.xlane.f32.xlu1 %v285_v23  ;;  %1280 = vmatprep.subr.mxu0 %v3253_v10 }
  0x43   :  { %1281 = vmatpush3.msra.mxu0 %v451_v16  ;;  %1295 = vmatprep.subr.mxu1 %v3253_v10 }
  0x44   :  { %1282 = vmatprep.subr.mxu0 %v3253_v10  ;;  %1296 = vmatpush3.msra.mxu1 %v453_v0 }
  0x45   :  { %214 = vadd.xlane.f32.xlu0 %v213_v21  ;;  %1283 = vmatpush3.msra.mxu0 %v450_v1  ;;  %v473_v21 = vlaneseq }
  0x46   :  { %428 = vmax.xlane.f32.xlu1 %v427_v51  ;;  %1284 = vmatprep.subr.mxu0 %v3253_v10 }
  0x47   :  { %1285 = vmatpush3.msra.mxu0 %v449_v59  ;;  %1297 = vmatprep.subr.mxu1 %v3253_v10  ;;  %v474_v43 = vand.u32 127, %v473_v21  ;;  %v2345_v51 = vshrl.u32 %v473_v21, 7 }
  0x48   :  { %1286 = vmatprep.subr.mxu0 %v3253_v10  ;;  %1298 = vmatpush3.msra.mxu1 %v452_v58 }
  0x49   :  { %356 = vmax.xlane.f32.xlu0 %v355_v49  ;;  %1287 = vmatpush3.msra.mxu0 %v448_v22  ;;  %v479_v6 = vadd.s32 4294967288, %v474_v43  ;;  %v486_v42 = vadd.s32 4294967280, %v474_v43  ;;  %v493_v44 = vadd.s32 4294967272, %v474_v43  ;;  %v500_v32 = vadd.s32 4294967264, %v474_v43 }
  0x4a   :  { %437 = vmax.xlane.f32.xlu1 %v436_v3  ;;  %1288 = vmatprep.mubr.msk.f32.mxu0 %vm1426_vm0, %v3253_v10  ;;  %v2350_v3 = vsub.s32 %v474_v43, %v2345_v51  ;;  %v507_v8 = vadd.s32 4294967256, %v474_v43 }
  0x4b   :  { %1299 = vmatprep.subr.mxu1 %v3253_v10  ;;  %1307 = vmatprep.mubr.msk.f32.mxu1 %vm1426_vm0, %v3253_v10  ;;  %v2353_v28 = vsub.s32 %v479_v6, %v2345_v51 }
  0x4c   :  { %1300 = vmatpush3.msra.mxu1 %v451_v16  ;;  %1310 = vmatprep.subr.mxu0 %v3253_v10  ;;  %v2364_v16 = vsub.s32 %v500_v32, %v2345_v51  ;;  %v2367_v6 = vsub.s32 %v507_v8, %v2345_v51 }
  0x4d   :  { %365 = vmax.xlane.f32.xlu0 %v364_v31  ;;  %1301 = vmatprep.subr.mxu1 %v3253_v10  ;;  %v2356_v31 = vsub.s32 %v486_v42, %v2345_v51 }
  0x4e   :  { %446 = vmax.xlane.f32.xlu1 %v445_v12  ;;  %1302 = vmatpush3.msra.mxu1 %v450_v1  ;;  %v2361_v12 = vsub.s32 %v493_v44, %v2345_v51  ;;  %v514_v1 = vadd.s32 4294967248, %v474_v43 }
  0x4f   :  { %1303 = vmatprep.subr.mxu1 %v3253_v10 }
  0x50   :  { %1304 = vmatpush3.msra.mxu1 %v449_v59 }
  0x51   :  { %374 = vmax.xlane.f32.xlu0 %v373_v18  ;;  %1305 = vmatprep.subr.mxu1 %v3253_v10  ;;  %v521_v10 = vadd.s32 4294967240, %v474_v43 }
  0x52   :  { %1306 = vmatpush3.msra.mxu1 %v448_v22 }
  0x99   :  { %v224_v38 = vpop.xlane.xlu1 %223 }
  0x9a   :  { %v152_v37 = vpop.xlane.xlu0 %151  ;;  %v296_v59 = vmul.f32 0.0009765625, %v224_v38 }
  0x9b   :  { %v288_v2 = vmul.f32 0.0009765625, %v152_v37 }
  0x9d   :  { %v233_v36 = vpop.xlane.xlu1 %232 }
  0x9e   :  { %v297_v0 = vmul.f32 0.0009765625, %v233_v36 }
  0x9f   :  { %v161_v62 = vpop.xlane.xlu0 %160 }
  0xa0   :  { %v289_v22 = vmul.f32 0.0009765625, %v161_v62  ;;  %v535_v11 = vrot.slane %v297_v0, %v2353_v28  ;;  %v2374_v62 = vsub.s32 %v514_v1, %v2345_v51 }
  0xa2   :  { %v242_v26 = vpop.xlane.xlu1 %241 }
  0xa3   :  { %v298_v18 = vmul.f32 0.0009765625, %v242_v26 }
  0xa4   :  { %v170_v48 = vpop.xlane.xlu0 %169 }
  0xa5   :  { %v290_v42 = vmul.f32 0.0009765625, %v170_v48  ;;  %v540_v5 = vrot.slane %v298_v18, %v2356_v31  ;;  %v531_v48 = vrot.slane %v296_v59, %v2350_v3  ;;  %v478_v18 = vrot.slane %v288_v2, %v2350_v3 }
  0xa7   :  { %v251_v19 = vpop.xlane.xlu1 %250  ;;  %v490_v8 = vrot.slane %v290_v42, %v2356_v31 }
  0xa8   :  { %v299_v21 = vmul.f32 0.0009765625, %v251_v19 }
  0xaa   :  { %v179_v27 = vpop.xlane.xlu0 %178  ;;  %v545_v43 = vrot.slane %v299_v21, %v2361_v12 }
  0xab   :  { %v2333_v54 = vpop.xlane.xlu1 %320  ;;  %v291_v26 = vmul.f32 0.0009765625, %v179_v27 }
  0xad   :  { %v497_v1 = vrot.slane %v291_v26, %v2361_v12 }
  0xae   :  { %v2335_v56 = vpop.xlane.xlu0 %311 }
  0xaf   :  { %v2337_v15 = vpop.xlane.xlu1 %392 }
  0xb2   :  { %v2339_v23 = vpop.xlane.xlu0 %383 }
  0xb3   :  { %v260_v24 = vpop.xlane.xlu1 %259 }
  0xb4   :  { %v300_v36 = vmul.f32 0.0009765625, %v260_v24  ;;  %v483_v24 = vrot.slane %v289_v22, %v2353_v28 }
  0xb6   :  { %v188_v41 = vpop.xlane.xlu0 %187  ;;  %v550_v27 = vrot.slane %v300_v36, %v2364_v16 }
  0xb7   :  { %v2341_v50 = vpop.xlane.xlu1 %401  ;;  %v292_v38 = vmul.f32 0.0009765625, %v188_v41  ;;  %v2384_v41 = vsub.s32 %v521_v10, %v2345_v51 }
  0xb9   :  { %v504_v21 = vrot.slane %v292_v38, %v2364_v16 }
  0xba   :  { %v2343_v25 = vpop.xlane.xlu0 %329 }
  0xbb   :  { %v269_v29 = vpop.xlane.xlu1 %268 }
  0xbc   :  { %v301_v47 = vmul.f32 0.0009765625, %v269_v29 }
  0xbe   :  { %v197_v49 = vpop.xlane.xlu0 %196  ;;  %v555_v59 = vrot.slane %v301_v47, %v2367_v6 }
  0xbf   :  { %v2347_v9 = vpop.xlane.xlu1 %410  ;;  %v293_v37 = vmul.f32 0.0009765625, %v197_v49 }
  0xc1   :  { %v511_v2 = vrot.slane %v293_v37, %v2367_v6 }
  0xc2   :  { %v2358_v52 = vpop.xlane.xlu0 %338 }
  0xc3   :  { %v278_v58 = vpop.xlane.xlu1 %277 }
  0xc4   :  { %v302_v19 = vmul.f32 0.0009765625, %v278_v58  ;;  %v536_v58 = vsel %vm484_vm1, %v535_v11, %v531_v48 }
  0xc5   :  { %v541_v49 = vsel %vm491_vm2, %v540_v5, %v536_v58 }
  0xc6   :  { %v206_v44 = vpop.xlane.xlu0 %205  ;;  %v560_v42 = vrot.slane %v302_v19, %v2374_v62  ;;  %v546_v10 = vsel %vm498_vm3, %v545_v43, %v541_v49  ;;  %v705_v43 = vrot.slane %v2337_v15, %v2353_v28  ;;  %v666_v49 = vrot.slane %v2333_v54, %v2353_v28 }
  0xc7   :  { %v2370_v32 = vpop.xlane.xlu1 %419  ;;  %v294_v29 = vmul.f32 0.0009765625, %v206_v44  ;;  %v485_v44 = vsel %vm484_vm1, %v483_v24, %v478_v18  ;;  %v551_v26 = vsel %vm505_vm4, %v550_v27, %v546_v10  ;;  %v701_v27 = vrot.slane %v2339_v23, %v2350_v3 }
  0xc8   :  { %v492_v11 = vsel %vm491_vm2, %v490_v8, %v485_v44  ;;  %v556_v19 = vsel %vm512_vm5, %v555_v59, %v551_v26  ;;  %v710_v59 = vrot.slane %v2341_v50, %v2356_v31  ;;  %v715_v23 = vrot.slane %v2347_v9, %v2361_v12 }
  0xc9   :  { %v518_v47 = vrot.slane %v294_v29, %v2374_v62  ;;  %v499_v38 = vsel %vm498_vm3, %v497_v1, %v492_v11  ;;  %v561_v8 = vsel %vm519_vm6, %v560_v42, %v556_v19  ;;  %v671_v44 = vrot.slane %v2343_v25, %v2356_v31 }
  0xca   :  { %v2381_v0 = vpop.xlane.xlu0 %347  ;;  %v506_v37 = vsel %vm505_vm4, %v504_v21, %v499_v38  ;;  %v662_v21 = vrot.slane %v2335_v56, %v2350_v3  ;;  %v720_v50 = vrot.slane %v2370_v32, %v2364_v16  ;;  %v676_v54 = vrot.slane %v2358_v52, %v2361_v12 }
  0xcb   :  { %v287_v22 = vpop.xlane.xlu1 %286  ;;  %v513_v29 = vsel %vm512_vm5, %v511_v2, %v506_v37  ;;  %v706_v2 = vsel %vm484_vm1, %v705_v43, %v701_v27  ;;  %v681_v3 = vrot.slane %v2381_v0, %v2364_v16  ;;  %v3270_v31 = vmov 0.0   ;;  %v456_v27 = vld [vmem:[%s3246_s2] sm:$0xf] }
  0xcc   :  { %v303_v36 = vmul.f32 0.0009765625, %v287_v22  ;;  %v520_v22 = vsel %vm519_vm6, %v518_v47, %v513_v29  ;;  %v711_v9 = vsel %vm491_vm2, %v710_v59, %v706_v2  ;;  %v667_v32 = vsel %vm484_vm1, %v666_v49, %v662_v21 }
  0xcd   :  { %v716_v11 = vsel %vm498_vm3, %v715_v23, %v711_v9  ;;  %v672_v26 = vsel %vm491_vm2, %v671_v44, %v667_v32  ;;  %v898_v44 = vsub.s32 0, %v2345_v51  ;;  %v933_v2 = vsub.s32 1, %v2345_v51  ;;  %v1321_v51 = vld [vmem:[%s3244_s0 + $0x40] sm:$0xff] }
  0xce   :  { %v565_v5 = vrot.slane %v303_v36, %v2384_v41  ;;  %v215_v48 = vpop.xlane.xlu0 %214  ;;  %v721_v47 = vsel %vm505_vm4, %v720_v50, %v716_v11  ;;  %v677_v0 = vsel %vm498_vm3, %v676_v54, %v672_v26  ;;  %v1324_v11 = vld [vmem:[%s3244_s0 + $0x58] sm:$0xff] }
  0xcf   :  { %v295_v58 = vmul.f32 0.0009765625, %v215_v48  ;;  %v429_v24 = vpop.xlane.xlu1 %428  ;;  %v682_v38 = vsel %vm505_vm4, %v681_v3, %v677_v0 }
  0xd0   :  { %v566_v1 = vsel %vm526_vm7, %v565_v5, %v561_v8  ;;  %v725_v56 = vrot.slane %v429_v24, %v2367_v6 }
  0xd1   :  { %v525_v18 = vrot.slane %v295_v58, %v2384_v41 }
  0xd2   :  { %v357_v15 = vpop.xlane.xlu0 %356  ;;  %v726_v48 = vsel %vm512_vm5, %v725_v56, %v721_v47  ;;  %v1326_v47 = vld [vmem:[%s3244_s0 + $0x68] sm:$0xff] }
  0xd3   :  { %v527_v42 = vsel %vm526_vm7, %v525_v18, %v520_v22  ;;  %v438_v36 = vpop.xlane.xlu1 %437  ;;  %v686_v52 = vrot.slane %v357_v15, %v2367_v6 }
  0xd4   :  { %v568_v10 = vsel %vm567_vm8, %v566_v1, %v527_v42  ;;  %v730_v25 = vrot.slane %v438_v36, %v2374_v62 }
  0xd5   :  { %1289 = vmatmul.mubr.msk.f32.vlgmr.msra.gmra.mxu0 %vm569_vm9, %v568_v10  ;;  %v687_v6 = vsel %vm512_vm5, %v686_v52, %v682_v38 }
  0xd6   :  { %v366_v28 = vpop.xlane.xlu0 %365  ;;  %1312 = vmatprep.mubr.msk.f32.mxu0 %vm1426_vm0, %v3270_v31  ;;  %v731_v19 = vsel %vm519_vm6, %v730_v25, %v726_v48  ;;  %1311 = vmatpush3.msk.msra.mxu0 %vm816_vm10, %v456_v27  ;;  %v1322_v25 = vld [vmem:[%s3244_s0 + $0x48] sm:$0xff]  ;;  %v1323_v31 = vld [vmem:[%s3244_s0 + $0x50] sm:$0xff]  ;;  %v1328_v48 = vld [vmem:[%s3244_s0 + $0x78] sm:$0xff] }
  0xd7   :  { %v447_v12 = vpop.xlane.xlu1 %446  ;;  %v691_v5 = vrot.slane %v366_v28, %v2374_v62  ;;  %v1333_v27 = vld [vmem:[%s3244_s0 + $0x20] sm:$0xff] }
  0xd8   :  { %v735_v16 = vrot.slane %v447_v12, %v2384_v41  ;;  %v1325_v12 = vld [vmem:[%s3244_s0 + $0x60] sm:$0xff] }
  0xd9   :  { %v692_v37 = vsel %vm519_vm6, %v691_v5, %v687_v6  ;;  %v1330_v6 = vld [vmem:[%s3244_s0 + $0x8] sm:$0xff] }
  0xda   :  { %v375_v58 = vpop.xlane.xlu0 %374  ;;  %v736_v24 = vsel %vm526_vm7, %v735_v16, %v731_v19  ;;  %v1327_v16 = vld [vmem:[%s3244_s0 + $0x70] sm:$0xff]  ;;  %v1329_v19 = vld [vmem:[%s3244_s0] sm:$0xff] }
  0xdb   :  { %v696_v43 = vrot.slane %v375_v58, %v2384_v41 }
  0xdd   :  { %v697_v62 = vsel %vm526_vm7, %v696_v43, %v692_v37  ;;  %v1331_v43 = vld [vmem:[%s3244_s0 + $0x10] sm:$0xff] }
  0xde   :  { %v737_v8 = vsel %vm567_vm8, %v736_v24, %v697_v62  ;;  %v1332_v62 = vld [vmem:[%s3244_s0 + $0x18] sm:$0xff] }
  0xdf   :  { %1308 = vmatmul.mubr.msk.f32.vlgmr.msra.gmra.mxu1 %vm569_vm9, %v737_v8 }
 0x195   :  { %v638_v29 = vpop.f32.mrf.mxu0 }
 0x196   :  { %v642_v59 = vmax.f32 %v638_v29, 0.0 }
 0x197   :  { %v1290_v18 = vpop.f32.mrf.mxu0 }
 0x198   :  { %v1334_v18 = vld [vmem:[%s3244_s0 + $0x28] sm:$0xff] }
 0x19f   :  { %v806_v1 = vpop.f32.mrf.mxu1 }
 0x1a0   :  { %v810_v22 = vmax.f32 %v806_v1, 0.0 }
 0x1a1   :  { %v1309_v41 = vpop.f32.mrf.mxu1 }
 0x1a2   :  { %v811_v15 = vadd.f32 %v810_v22, %v642_v59  ;;  %v1335_v59 = vld [vmem:[%s3244_s0 + $0x30] sm:$0xff]  ;;  %v1336_v41 = vld [vmem:[%s3244_s0 + $0x38] sm:$0xff] }
 0x1a4   :  { %1313 = vmatmul.mubr.msk.f32.vlgmr.msra.gmra.mxu0 %vm812_vm11, %v811_v15 }
 0x264   :  { %v886_v49 = vpop.f32.mrf.mxu0 }
 0x265   :  { %v1251_v21 = vmul.f32 -1.442695, %v886_v49 }
 0x266   :  { %v1314_v23 = vpop.f32.mrf.mxu0 }
 0x267   :  { %1317 = vpow2.f32 %v1251_v21  ;;  %v1337_v23 = vld [vmem:[%s3244_s0 + $0x80] sm:$0xff] }
 0x274   :  { %v1318_v42 = vpop.eup %1317 }
 0x275   :  { %v893_v36 = vadd.f32 1.0, %v1318_v42 }
 0x277   :  { %1319 = vrcp.f32 %v893_v36  ;;  %v1338_v36 = vld [vmem:[%s3244_s0 + $0x88] sm:$0xff] }
 0x284   :  { %v1320_v50 = vpop.eup %1319 }
 0x285   :  { %v899_v10 = vrot.slane %v1320_v50, %v898_v44  ;;  %v934_v54 = vrot.slane %v1320_v50, %v933_v2  ;;  %v1339_v50 = vld [vmem:[%s3244_s0 + $0x90] sm:$0xff]  ;;  %v1340_v2 = vld [vmem:[%s3244_s0 + $0x98] sm:$0xff] }
 0x287   :  { %905 = vbcast.lane.b32.xlu1 %v899_v10, 264  ;;  %901 = vbcast.lane.b32.xlu0 %v899_v10, 256 }
 0x28b   :  { %909 = vbcast.lane.b32.xlu1 %v899_v10, 272  ;;  %917 = vbcast.lane.b32.xlu0 %v899_v10, 288 }
 0x28f   :  { %913 = vbcast.lane.b32.xlu1 %v899_v10, 280  ;;  %925 = vbcast.lane.b32.xlu0 %v899_v10, 304 }
 0x293   :  { %921 = vbcast.lane.b32.xlu1 %v899_v10, 296  ;;  %936 = vbcast.lane.b32.xlu0 %v934_v54, 256 }
 0x297   :  { %929 = vbcast.lane.b32.xlu1 %v899_v10, 312  ;;  %944 = vbcast.lane.b32.xlu0 %v934_v54, 272 }
 0x29b   :  { %940 = vbcast.lane.b32.xlu1 %v934_v54, 264  ;;  %952 = vbcast.lane.b32.xlu0 %v934_v54, 288 }
 0x29f   :  { %948 = vbcast.lane.b32.xlu1 %v934_v54, 280  ;;  %960 = vbcast.lane.b32.xlu0 %v934_v54, 304 }
 0x2a3   :  { %956 = vbcast.lane.b32.xlu1 %v934_v54, 296 }
 0x2a7   :  { %964 = vbcast.lane.b32.xlu1 %v934_v54, 312 }
 0x2f9   :  { %v906_v56 = vpop.permute.xlu1 %905  ;;  %v902_v9 = vpop.permute.xlu0 %901 }
 0x2fa   :  { %968 = vst.msk [vmem:[%s3247_s4 + $0x8] sm:$0xff] %vm966_vm12, %v906_v56  ;;  %v991_v3 = vmul.f32 %v1321_v51, %v906_v56  ;;  %v992_v28 = vmul.f32 %v1322_v25, %v906_v56  ;;  %v993_v32 = vmul.f32 %v1323_v31, %v906_v56  ;;  %v994_v52 = vmul.f32 %v1324_v11, %v906_v56  ;;  %v1342_v51 = vld [vmem:[%s3244_s0 + $0xa8] sm:$0xff]  ;;  %v1343_v25 = vld [vmem:[%s3244_s0 + $0xb0] sm:$0xff]  ;;  %v1344_v31 = vld [vmem:[%s3244_s0 + $0xb8] sm:$0xff] }
 0x2fb   :  { %967 = vst.msk [vmem:[%s3247_s4] sm:$0xff] %vm966_vm12, %v902_v9  ;;  %v995_v26 = vmul.f32 %v1325_v12, %v906_v56  ;;  %v996_v5 = vmul.f32 %v1326_v47, %v906_v56  ;;  %v997_v0 = vmul.f32 %v1327_v16, %v906_v56  ;;  %v998_v38 = vmul.f32 %v1328_v48, %v906_v56  ;;  %v1341_v56 = vld [vmem:[%s3244_s0 + $0xa0] sm:$0xff]  ;;  %v1346_v12 = vld [vmem:[%s3244_s0 + $0x108] sm:$0xff]  ;;  %v1347_v47 = vld [vmem:[%s3244_s0 + $0x110] sm:$0xff] }
 0x2fc   :  { %1119 = vst [vmem:[%s3248_s3 + $0x40] sm:$0xff] %v991_v3  ;;  %1120 = vst [vmem:[%s3248_s3 + $0x48] sm:$0xff] %v992_v28  ;;  %v983_v58 = vmul.f32 %v1329_v19, %v902_v9  ;;  %v984_v24 = vmul.f32 %v1330_v6, %v902_v9  ;;  %v985_v37 = vmul.f32 %v1331_v43, %v902_v9  ;;  %v1345_v11 = vld [vmem:[%s3244_s0 + $0x100] sm:$0xff]  ;;  %v1350_v6 = vld [vmem:[%s3244_s0 + $0xd0] sm:$0xff] }
 0x2fd   :  { %1121 = vst [vmem:[%s3248_s3 + $0x50] sm:$0xff] %v993_v32  ;;  %1122 = vst [vmem:[%s3248_s3 + $0x58] sm:$0xff] %v994_v52  ;;  %v986_v8 = vmul.f32 %v1332_v62, %v902_v9  ;;  %v987_v29 = vmul.f32 %v1333_v27, %v902_v9  ;;  %v988_v1 = vmul.f32 %v1334_v18, %v902_v9  ;;  %v910_v49 = vpop.permute.xlu1 %909  ;;  %v918_v21 = vpop.permute.xlu0 %917  ;;  %v1351_v43 = vld [vmem:[%s3244_s0 + $0xd8] sm:$0xff]  ;;  %v1352_v62 = vld [vmem:[%s3244_s0 + $0xe0] sm:$0xff] }
 0x2fe   :  { %1123 = vst [vmem:[%s3248_s3 + $0x60] sm:$0xff] %v995_v26  ;;  %1124 = vst [vmem:[%s3248_s3 + $0x68] sm:$0xff] %v996_v5  ;;  %v989_v22 = vmul.f32 %v1335_v59, %v902_v9  ;;  %v990_v15 = vmul.f32 %v1336_v41, %v902_v9  ;;  %v999_v42 = vmul.f32 %v1337_v23, %v910_v49  ;;  %v1353_v27 = vld [vmem:[%s3244_s0 + $0xe8] sm:$0xff]  ;;  %v1354_v18 = vld [vmem:[%s3244_s0 + $0xf0] sm:$0xff] }
 0x2ff   :  { %1125 = vst [vmem:[%s3248_s3 + $0x70] sm:$0xff] %v997_v0  ;;  %1126 = vst [vmem:[%s3248_s3 + $0x78] sm:$0xff] %v998_v38  ;;  %v1000_v44 = vmul.f32 %v1338_v36, %v910_v49  ;;  %v1001_v10 = vmul.f32 %v1339_v50, %v910_v49  ;;  %v1002_v54 = vmul.f32 %v1340_v2, %v910_v49  ;;  %v1355_v59 = vld [vmem:[%s3244_s0 + $0xf8] sm:$0xff]  ;;  %v1358_v36 = vld [vmem:[%s3244_s0 + $0x150] sm:$0xff] }
 0x300   :  { %1111 = vst [vmem:[%s3248_s3] sm:$0xff] %v983_v58  ;;  %1112 = vst [vmem:[%s3248_s3 + $0x8] sm:$0xff] %v984_v24  ;;  %v1003_v9 = vmul.f32 %v1341_v56, %v910_v49  ;;  %v1004_v3 = vmul.f32 %v1342_v51, %v910_v49  ;;  %v1005_v28 = vmul.f32 %v1343_v25, %v910_v49  ;;  %v1359_v50 = vld [vmem:[%s3244_s0 + $0x158] sm:$0xff]  ;;  %v1360_v2 = vld [vmem:[%s3244_s0 + $0x160] sm:$0xff] }
 0x301   :  { %1113 = vst [vmem:[%s3248_s3 + $0x10] sm:$0xff] %v985_v37  ;;  %1114 = vst [vmem:[%s3248_s3 + $0x18] sm:$0xff] %v986_v8  ;;  %v1006_v32 = vmul.f32 %v1344_v31, %v910_v49  ;;  %v1015_v52 = vmul.f32 %v1345_v11, %v918_v21  ;;  %v1016_v26 = vmul.f32 %v1346_v12, %v918_v21  ;;  %v914_v19 = vpop.permute.xlu1 %913  ;;  %v926_v58 = vpop.permute.xlu0 %925  ;;  %v1363_v25 = vld [vmem:[%s3244_s0 + $0x210] sm:$0xff]  ;;  %v1364_v31 = vld [vmem:[%s3244_s0 + $0x218] sm:$0xff] }
 0x302   :  { %969 = vst.msk [vmem:[%s3247_s4 + $0x10] sm:$0xff] %vm966_vm12, %v910_v49  ;;  %971 = vst.msk [vmem:[%s3247_s4 + $0x20] sm:$0xff] %vm966_vm12, %v918_v21  ;;  %v1017_v5 = vmul.f32 %v1347_v47, %v918_v21  ;;  %v1018_v16 = vmul.f32 %v918_v21, %v1845_v63  ;;  %v1019_v0 = vmul.f32 %v918_v21, %v1881_v30  ;;  %v1348_v30 = vld [vmem:[%s3244_s0 + $0xc0] sm:$0xff]  ;;  %v1366_v12 = vld [vmem:[%s3244_s0 + $0x228] sm:$0xff] }
 0x303   :  { %1115 = vst [vmem:[%s3248_s3 + $0x20] sm:$0xff] %v987_v29  ;;  %1116 = vst [vmem:[%s3248_s3 + $0x28] sm:$0xff] %v988_v1  ;;  %v1020_v63 = vmul.f32 %v918_v21, %v1920_v46  ;;  %v1021_v48 = vmul.f32 %v918_v21, %v1969_v20  ;;  %v1022_v38 = vmul.f32 %v918_v21, %v2059_v14  ;;  %v1349_v20 = vld [vmem:[%s3244_s0 + $0xc8] sm:$0xff]  ;;  %v1365_v11 = vld [vmem:[%s3244_s0 + $0x220] sm:$0xff] }
 0x304   :  { %1117 = vst [vmem:[%s3248_s3 + $0x30] sm:$0xff] %v989_v22  ;;  %1118 = vst [vmem:[%s3248_s3 + $0x38] sm:$0xff] %v990_v15  ;;  %v1007_v46 = vmul.f32 %v1348_v30, %v914_v19  ;;  %v1008_v14 = vmul.f32 %v1349_v20, %v914_v19  ;;  %v1009_v24 = vmul.f32 %v1350_v6, %v914_v19  ;;  %v1367_v47 = vld [vmem:[%s3244_s0 + $0x230] sm:$0xff] }
 0x305   :  { %1127 = vst [vmem:[%s3248_s3 + $0x80] sm:$0xff] %v999_v42  ;;  %1128 = vst [vmem:[%s3248_s3 + $0x88] sm:$0xff] %v1000_v44  ;;  %v1010_v37 = vmul.f32 %v1351_v43, %v914_v19  ;;  %v1011_v8 = vmul.f32 %v1352_v62, %v914_v19  ;;  %v1012_v29 = vmul.f32 %v1353_v27, %v914_v19  ;;  %v922_v23 = vpop.permute.xlu1 %921  ;;  %v937_v42 = vpop.permute.xlu0 %936 }
 0x306   :  { %1129 = vst [vmem:[%s3248_s3 + $0x90] sm:$0xff] %v1001_v10  ;;  %1130 = vst [vmem:[%s3248_s3 + $0x98] sm:$0xff] %v1002_v54  ;;  %v1013_v1 = vmul.f32 %v1354_v18, %v914_v19  ;;  %v1014_v22 = vmul.f32 %v1355_v59, %v914_v19  ;;  %v1031_v41 = vmul.f32 %v926_v58, %v1990_v55 }
 0x307   :  { %1131 = vst [vmem:[%s3248_s3 + $0xa0] sm:$0xff] %v1003_v9  ;;  %1132 = vst [vmem:[%s3248_s3 + $0xa8] sm:$0xff] %v1004_v3  ;;  %v1032_v15 = vmul.f32 %v926_v58, %v2009_v60  ;;  %v1033_v49 = vmul.f32 %v926_v58, %v2014_v35  ;;  %v1034_v21 = vmul.f32 %v926_v58, %v2033_v40 }
 0x308   :  { %1133 = vst [vmem:[%s3248_s3 + $0xb0] sm:$0xff] %v1005_v28  ;;  %1134 = vst [vmem:[%s3248_s3 + $0xb8] sm:$0xff] %v1006_v32  ;;  %v1035_v55 = vmul.f32 %v926_v58, %v2099_v17  ;;  %v1036_v60 = vmul.f32 %v926_v58, %v2146_v33  ;;  %v1037_v35 = vmul.f32 %v926_v58, %v2195_v13  ;;  %v1356_v17 = vld [vmem:[%s3244_s0 + $0x140] sm:$0xff]  ;;  %v1357_v13 = vld [vmem:[%s3244_s0 + $0x148] sm:$0xff] }
 0x309   :  { %1143 = vst [vmem:[%s3248_s3 + $0x100] sm:$0xff] %v1015_v52  ;;  %1144 = vst [vmem:[%s3248_s3 + $0x108] sm:$0xff] %v1016_v26  ;;  %v1038_v40 = vmul.f32 %v926_v58, %v2224_v57  ;;  %v1023_v33 = vmul.f32 %v1356_v17, %v922_v23  ;;  %v1024_v57 = vmul.f32 %v1357_v13, %v922_v23 }
 0x30a   :  { %1145 = vst [vmem:[%s3248_s3 + $0x110] sm:$0xff] %v1017_v5  ;;  %1146 = vst [vmem:[%s3248_s3 + $0x118] sm:$0xff] %v1018_v16  ;;  %v1025_v44 = vmul.f32 %v1358_v36, %v922_v23  ;;  %v1026_v10 = vmul.f32 %v1359_v50, %v922_v23  ;;  %v1027_v54 = vmul.f32 %v1360_v2, %v922_v23  ;;  %v1368_v16 = vld [vmem:[%s3244_s0 + $0x238] sm:$0xff] }
 0x30b   :  { %970 = vst.msk [vmem:[%s3247_s4 + $0x18] sm:$0xff] %vm966_vm12, %v914_v19  ;;  %973 = vst.msk [vmem:[%s3247_s4 + $0x30] sm:$0xff] %vm966_vm12, %v926_v58  ;;  %v1028_v56 = vmul.f32 %v922_v23, %v2069_v61  ;;  %v1029_v9 = vmul.f32 %v922_v23, %v2119_v53  ;;  %v1030_v51 = vmul.f32 %v922_v23, %v2162_v39  ;;  %v1361_v61 = vld [vmem:[%s3244_s0 + $0x200] sm:$0xff]  ;;  %v1362_v39 = vld [vmem:[%s3244_s0 + $0x208] sm:$0xff] }
 0x30c   :  { %1147 = vst [vmem:[%s3248_s3 + $0x120] sm:$0xff] %v1019_v0  ;;  %1148 = vst [vmem:[%s3248_s3 + $0x128] sm:$0xff] %v1020_v63  ;;  %v1047_v53 = vmul.f32 %v1361_v61, %v937_v42  ;;  %v1048_v3 = vmul.f32 %v1362_v39, %v937_v42  ;;  %v1049_v28 = vmul.f32 %v1363_v25, %v937_v42  ;;  %v930_v63 = vpop.permute.xlu1 %929  ;;  %v1385_v61 = vld [vmem:[%s3244_s0 + $0x300] sm:$0xff]  ;;  %v1386_v39 = vld [vmem:[%s3244_s0 + $0x308] sm:$0xff] }
 0x30d   :  { %1149 = vst [vmem:[%s3248_s3 + $0x130] sm:$0xff] %v1021_v48  ;;  %1150 = vst [vmem:[%s3248_s3 + $0x138] sm:$0xff] %v1022_v38  ;;  %v1050_v32 = vmul.f32 %v1364_v31, %v937_v42  ;;  %v1051_v52 = vmul.f32 %v1365_v11, %v937_v42  ;;  %v1052_v26 = vmul.f32 %v1366_v12, %v937_v42  ;;  %v945_v48 = vpop.permute.xlu0 %944  ;;  %v1387_v25 = vld [vmem:[%s3244_s0 + $0x310] sm:$0xff]  ;;  %v1388_v31 = vld [vmem:[%s3244_s0 + $0x318] sm:$0xff] }
 0x30e   :  { %1135 = vst [vmem:[%s3248_s3 + $0xc0] sm:$0xff] %v1007_v46  ;;  %1136 = vst [vmem:[%s3248_s3 + $0xc8] sm:$0xff] %v1008_v14  ;;  %v1053_v5 = vmul.f32 %v1367_v47, %v937_v42  ;;  %v1054_v0 = vmul.f32 %v1368_v16, %v937_v42  ;;  %v1039_v38 = vmul.f32 %v930_v63, %v2088_v45  ;;  %v3271_v45 = vld [vmem:[#allocation6_spill] sm:$0xff]  ;;  %v3273_v46 = vld [vmem:[#allocation3_spill] sm:$0xff] }
 0x30f   :  { %1137 = vst [vmem:[%s3248_s3 + $0xd0] sm:$0xff] %v1009_v24  ;;  %1138 = vst [vmem:[%s3248_s3 + $0xd8] sm:$0xff] %v1010_v37  ;;  %v1040_v19 = vmul.f32 %v930_v63, %v2093_v34  ;;  %v1041_v58 = vmul.f32 %v930_v63, %v2125_v4  ;;  %v1042_v30 = vmul.f32 %v930_v63, %v2168_v7  ;;  %v3272_v4 = vld [vmem:[#allocation2_spill] sm:$0xff]  ;;  %v3274_v14 = vld [vmem:[#allocation5_spill] sm:$0xff] }
 0x310   :  { %1139 = vst [vmem:[%s3248_s3 + $0xe0] sm:$0xff] %v1011_v8  ;;  %1140 = vst [vmem:[%s3248_s3 + $0xe8] sm:$0xff] %v1012_v29  ;;  %v1043_v34 = vmul.f32 %v930_v63, %v3271_v45  ;;  %v1044_v7 = vmul.f32 %v930_v63, %v3272_v4  ;;  %v1045_v20 = vmul.f32 %v930_v63, %v3273_v46  ;;  %v1369_v24 = vld [vmem:[%s3244_s0 + $0x280] sm:$0xff]  ;;  %v1370_v37 = vld [vmem:[%s3244_s0 + $0x288] sm:$0xff] }
 0x311   :  { %1141 = vst [vmem:[%s3248_s3 + $0xf0] sm:$0xff] %v1013_v1  ;;  %1142 = vst [vmem:[%s3248_s3 + $0xf8] sm:$0xff] %v1014_v22  ;;  %v1046_v6 = vmul.f32 %v930_v63, %v3274_v14  ;;  %v1063_v43 = vmul.f32 %v1369_v24, %v945_v48  ;;  %v1064_v62 = vmul.f32 %v1370_v37, %v945_v48  ;;  %v1371_v8 = vld [vmem:[%s3244_s0 + $0x290] sm:$0xff]  ;;  %v1372_v29 = vld [vmem:[%s3244_s0 + $0x298] sm:$0xff] }
 0x312   :  { %1159 = vst [vmem:[%s3248_s3 + $0x180] sm:$0xff] %v1031_v41  ;;  %1160 = vst [vmem:[%s3248_s3 + $0x188] sm:$0xff] %v1032_v15  ;;  %v1065_v27 = vmul.f32 %v1371_v8, %v945_v48  ;;  %v1066_v18 = vmul.f32 %v1372_v29, %v945_v48  ;;  %v1373_v1 = vld [vmem:[%s3244_s0 + $0x2a0] sm:$0xff]  ;;  %v1374_v22 = vld [vmem:[%s3244_s0 + $0x2a8] sm:$0xff] }
 0x313   :  { %1161 = vst [vmem:[%s3248_s3 + $0x190] sm:$0xff] %v1033_v49  ;;  %1162 = vst [vmem:[%s3248_s3 + $0x198] sm:$0xff] %v1034_v21  ;;  %v1067_v59 = vmul.f32 %v1373_v1, %v945_v48  ;;  %v1068_v41 = vmul.f32 %v1374_v22, %v945_v48  ;;  %v1375_v15 = vld [vmem:[%s3244_s0 + $0x2b0] sm:$0xff]  ;;  %v1376_v21 = vld [vmem:[%s3244_s0 + $0x2b8] sm:$0xff] }
 0x314   :  { %972 = vst.msk [vmem:[%s3247_s4 + $0x28] sm:$0xff] %vm966_vm12, %v922_v23  ;;  %975 = vst.msk [vmem:[%s3247_s4 + $0x40] sm:$0xff] %vm966_vm12, %v937_v42  ;;  %v1069_v49 = vmul.f32 %v1375_v15, %v945_v48  ;;  %v1378_v42 = vld [vmem:[%s3244_s0 + $0x248] sm:$0xff]  ;;  %v1389_v11 = vld [vmem:[%s3244_s0 + $0x320] sm:$0xff] }
 0x315   :  { %1163 = vst [vmem:[%s3248_s3 + $0x1a0] sm:$0xff] %v1035_v55  ;;  %1164 = vst [vmem:[%s3248_s3 + $0x1a8] sm:$0xff] %v1036_v60  ;;  %v1070_v55 = vmul.f32 %v1376_v21, %v945_v48  ;;  %v941_v60 = vpop.permute.xlu1 %940  ;;  %v1390_v12 = vld [vmem:[%s3244_s0 + $0x328] sm:$0xff]  ;;  %v1391_v47 = vld [vmem:[%s3244_s0 + $0x330] sm:$0xff] }
 0x316   :  { %1165 = vst [vmem:[%s3248_s3 + $0x1b0] sm:$0xff] %v1037_v35  ;;  %1166 = vst [vmem:[%s3248_s3 + $0x1b8] sm:$0xff] %v1038_v40  ;;  %v953_v35 = vpop.permute.xlu0 %952  ;;  %v1377_v40 = vld [vmem:[%s3244_s0 + $0x240] sm:$0xff]  ;;  %v1056_v17 = vmul.f32 %v1378_v42, %v941_v60  ;;  %v1392_v16 = vld [vmem:[%s3244_s0 + $0x338] sm:$0xff] }
 0x317   :  { %1151 = vst [vmem:[%s3248_s3 + $0x140] sm:$0xff] %v1023_v33  ;;  %1152 = vst [vmem:[%s3248_s3 + $0x148] sm:$0xff] %v1024_v57  ;;  %v1055_v23 = vmul.f32 %v1377_v40, %v941_v60  ;;  %v1379_v33 = vld [vmem:[%s3244_s0 + $0x250] sm:$0xff]  ;;  %v1380_v57 = vld [vmem:[%s3244_s0 + $0x258] sm:$0xff] }
 0x318   :  { %1153 = vst [vmem:[%s3248_s3 + $0x150] sm:$0xff] %v1025_v44  ;;  %1154 = vst [vmem:[%s3248_s3 + $0x158] sm:$0xff] %v1026_v10  ;;  %v1057_v13 = vmul.f32 %v1379_v33, %v941_v60  ;;  %v1058_v36 = vmul.f32 %v1380_v57, %v941_v60  ;;  %v1381_v44 = vld [vmem:[%s3244_s0 + $0x260] sm:$0xff]  ;;  %v1382_v10 = vld [vmem:[%s3244_s0 + $0x268] sm:$0xff] }
 0x319   :  { %1155 = vst [vmem:[%s3248_s3 + $0x160] sm:$0xff] %v1027_v54  ;;  %1156 = vst [vmem:[%s3248_s3 + $0x168] sm:$0xff] %v1028_v56  ;;  %v1059_v50 = vmul.f32 %v1381_v44, %v941_v60  ;;  %v1060_v2 = vmul.f32 %v1382_v10, %v941_v60  ;;  %v1383_v54 = vld [vmem:[%s3244_s0 + $0x270] sm:$0xff]  ;;  %v1396_v4 = vld [vmem:[%s3244_s0 + $0x2d8] sm:$0xff] }
 0x31a   :  { %1157 = vst [vmem:[%s3248_s3 + $0x170] sm:$0xff] %v1029_v9  ;;  %1158 = vst [vmem:[%s3248_s3 + $0x178] sm:$0xff] %v1030_v51  ;;  %v1061_v56 = vmul.f32 %v1383_v54, %v941_v60  ;;  %v1384_v9 = vld [vmem:[%s3244_s0 + $0x278] sm:$0xff]  ;;  %v1395_v45 = vld [vmem:[%s3244_s0 + $0x2d0] sm:$0xff] }
 0x31b   :  { %1175 = vst [vmem:[%s3248_s3 + $0x200] sm:$0xff] %v1047_v53  ;;  %1176 = vst [vmem:[%s3248_s3 + $0x208] sm:$0xff] %v1048_v3  ;;  %v1062_v51 = vmul.f32 %v1384_v9, %v941_v60  ;;  %v1079_v53 = vmul.f32 %v1385_v61, %v953_v35  ;;  %v1080_v3 = vmul.f32 %v1386_v39, %v953_v35  ;;  %v1397_v46 = vld [vmem:[%s3244_s0 + $0x2e0] sm:$0xff]  ;;  %v1398_v14 = vld [vmem:[%s3244_s0 + $0x2e8] sm:$0xff] }
 0x31c   :  { %1177 = vst [vmem:[%s3248_s3 + $0x210] sm:$0xff] %v1049_v28  ;;  %1178 = vst [vmem:[%s3248_s3 + $0x218] sm:$0xff] %v1050_v32  ;;  %v1081_v28 = vmul.f32 %v1387_v25, %v953_v35  ;;  %v1082_v32 = vmul.f32 %v1388_v31, %v953_v35  ;;  %v1399_v24 = vld [vmem:[%s3244_s0 + $0x2f0] sm:$0xff]  ;;  %v1400_v37 = vld [vmem:[%s3244_s0 + $0x2f8] sm:$0xff] }
 0x31d   :  { %974 = vst.msk [vmem:[%s3247_s4 + $0x38] sm:$0xff] %vm966_vm12, %v930_v63  ;;  %977 = vst.msk [vmem:[%s3247_s4 + $0x50] sm:$0xff] %vm966_vm12, %v945_v48  ;;  %v949_v63 = vpop.permute.xlu1 %948  ;;  %v961_v48 = vpop.permute.xlu0 %960  ;;  %v1401_v8 = vld [vmem:[%s3244_s0 + $0x380] sm:$0xff]  ;;  %v1402_v29 = vld [vmem:[%s3244_s0 + $0x388] sm:$0xff] }
 0x31e   :  { %1179 = vst [vmem:[%s3248_s3 + $0x220] sm:$0xff] %v1051_v52  ;;  %1180 = vst [vmem:[%s3248_s3 + $0x228] sm:$0xff] %v1052_v26  ;;  %v1083_v52 = vmul.f32 %v1389_v11, %v953_v35  ;;  %v1084_v26 = vmul.f32 %v1390_v12, %v953_v35  ;;  %v1403_v1 = vld [vmem:[%s3244_s0 + $0x390] sm:$0xff]  ;;  %v1404_v22 = vld [vmem:[%s3244_s0 + $0x398] sm:$0xff] }
 0x31f   :  { %1181 = vst [vmem:[%s3248_s3 + $0x230] sm:$0xff] %v1053_v5  ;;  %1182 = vst [vmem:[%s3248_s3 + $0x238] sm:$0xff] %v1054_v0  ;;  %v1085_v5 = vmul.f32 %v1391_v47, %v953_v35  ;;  %v1086_v0 = vmul.f32 %v1392_v16, %v953_v35  ;;  %v1405_v15 = vld [vmem:[%s3244_s0 + $0x3a0] sm:$0xff]  ;;  %v1406_v21 = vld [vmem:[%s3244_s0 + $0x3a8] sm:$0xff] }
 0x320   :  { %1167 = vst [vmem:[%s3248_s3 + $0x1c0] sm:$0xff] %v1039_v38  ;;  %1168 = vst [vmem:[%s3248_s3 + $0x1c8] sm:$0xff] %v1040_v19  ;;  %v1393_v38 = vld [vmem:[%s3244_s0 + $0x2c0] sm:$0xff]  ;;  %v1408_v40 = vld [vmem:[%s3244_s0 + $0x3b8] sm:$0xff] }
 0x321   :  { %1169 = vst [vmem:[%s3248_s3 + $0x1d0] sm:$0xff] %v1041_v58  ;;  %1170 = vst [vmem:[%s3248_s3 + $0x1d8] sm:$0xff] %v1042_v30  ;;  %v1071_v19 = vmul.f32 %v1393_v38, %v949_v63  ;;  %v1394_v58 = vld [vmem:[%s3244_s0 + $0x2c8] sm:$0xff]  ;;  %v957_v42 = vpop.permute.xlu1 %956  ;;  %v1417_v25 = vld [vmem:[%s3244_s0 + $0x3c0] sm:$0xff] }
 0x322   :  { %1171 = vst [vmem:[%s3248_s3 + $0x1e0] sm:$0xff] %v1043_v34  ;;  %1172 = vst [vmem:[%s3248_s3 + $0x1e8] sm:$0xff] %v1044_v7  ;;  %v1072_v30 = vmul.f32 %v1394_v58, %v949_v63  ;;  %v1073_v34 = vmul.f32 %v1395_v45, %v949_v63  ;;  %v1074_v7 = vmul.f32 %v1396_v4, %v949_v63  ;;  %v1418_v31 = vld [vmem:[%s3244_s0 + $0x3c8] sm:$0xff]  ;;  %v1419_v11 = vld [vmem:[%s3244_s0 + $0x3d0] sm:$0xff] }
 0x323   :  { %1173 = vst [vmem:[%s3248_s3 + $0x1f0] sm:$0xff] %v1045_v20  ;;  %1174 = vst [vmem:[%s3248_s3 + $0x1f8] sm:$0xff] %v1046_v6  ;;  %v1075_v20 = vmul.f32 %v1397_v46, %v949_v63  ;;  %v1076_v6 = vmul.f32 %v1398_v14, %v949_v63  ;;  %v1420_v12 = vld [vmem:[%s3244_s0 + $0x3d8] sm:$0xff]  ;;  %v1421_v47 = vld [vmem:[%s3244_s0 + $0x3e0] sm:$0xff] }
 0x324   :  { %1191 = vst [vmem:[%s3248_s3 + $0x280] sm:$0xff] %v1063_v43  ;;  %1192 = vst [vmem:[%s3248_s3 + $0x288] sm:$0xff] %v1064_v62  ;;  %v1077_v43 = vmul.f32 %v1399_v24, %v949_v63  ;;  %v1078_v62 = vmul.f32 %v1400_v37, %v949_v63  ;;  %v1422_v16 = vld [vmem:[%s3244_s0 + $0x3e8] sm:$0xff]  ;;  %v1424_v38 = vld [vmem:[%s3244_s0 + $0x3f8] sm:$0xff] }
 0x325   :  { %1193 = vst [vmem:[%s3248_s3 + $0x290] sm:$0xff] %v1065_v27  ;;  %1194 = vst [vmem:[%s3248_s3 + $0x298] sm:$0xff] %v1066_v18  ;;  %v1095_v27 = vmul.f32 %v1401_v8, %v961_v48  ;;  %v1096_v18 = vmul.f32 %v1402_v29, %v961_v48 }
 0x326   :  { %976 = vst.msk [vmem:[%s3247_s4 + $0x48] sm:$0xff] %vm966_vm12, %v941_v60  ;;  %979 = vst.msk [vmem:[%s3247_s4 + $0x60] sm:$0xff] %vm966_vm12, %v953_v35  ;;  %v1407_v60 = vld [vmem:[%s3244_s0 + $0x3b0] sm:$0xff] }
 0x327   :  { %1195 = vst [vmem:[%s3248_s3 + $0x2a0] sm:$0xff] %v1067_v59  ;;  %1196 = vst [vmem:[%s3248_s3 + $0x2a8] sm:$0xff] %v1068_v41  ;;  %v1097_v59 = vmul.f32 %v1403_v1, %v961_v48  ;;  %v1098_v41 = vmul.f32 %v1404_v22, %v961_v48  ;;  %v1101_v35 = vmul.f32 %v1407_v60, %v961_v48 }
 0x328   :  { %1197 = vst [vmem:[%s3248_s3 + $0x2b0] sm:$0xff] %v1069_v49  ;;  %1198 = vst [vmem:[%s3248_s3 + $0x2b8] sm:$0xff] %v1070_v55  ;;  %v1099_v49 = vmul.f32 %v1405_v15, %v961_v48  ;;  %v1100_v55 = vmul.f32 %v1406_v21, %v961_v48 }
 0x329   :  { %1183 = vst [vmem:[%s3248_s3 + $0x240] sm:$0xff] %v1055_v23  ;;  %1184 = vst [vmem:[%s3248_s3 + $0x248] sm:$0xff] %v1056_v17  ;;  %v1102_v23 = vmul.f32 %v1408_v40, %v961_v48  ;;  %v1409_v17 = vld [vmem:[%s3244_s0 + $0x340] sm:$0xff] }
 0x32a   :  { %1185 = vst [vmem:[%s3248_s3 + $0x250] sm:$0xff] %v1057_v13  ;;  %1186 = vst [vmem:[%s3248_s3 + $0x258] sm:$0xff] %v1058_v36  ;;  %v1087_v33 = vmul.f32 %v1409_v17, %v957_v42  ;;  %v1410_v13 = vld [vmem:[%s3244_s0 + $0x348] sm:$0xff]  ;;  %v1411_v36 = vld [vmem:[%s3244_s0 + $0x350] sm:$0xff] }
 0x32b   :  { %1187 = vst [vmem:[%s3248_s3 + $0x260] sm:$0xff] %v1059_v50  ;;  %1188 = vst [vmem:[%s3248_s3 + $0x268] sm:$0xff] %v1060_v2  ;;  %v1088_v57 = vmul.f32 %v1410_v13, %v957_v42  ;;  %v1089_v44 = vmul.f32 %v1411_v36, %v957_v42  ;;  %v1412_v50 = vld [vmem:[%s3244_s0 + $0x358] sm:$0xff]  ;;  %v1413_v2 = vld [vmem:[%s3244_s0 + $0x360] sm:$0xff] }
 0x32c   :  { %1189 = vst [vmem:[%s3248_s3 + $0x270] sm:$0xff] %v1061_v56  ;;  %1190 = vst [vmem:[%s3248_s3 + $0x278] sm:$0xff] %v1062_v51  ;;  %v1090_v10 = vmul.f32 %v1412_v50, %v957_v42  ;;  %v1091_v54 = vmul.f32 %v1413_v2, %v957_v42  ;;  %v1414_v56 = vld [vmem:[%s3244_s0 + $0x368] sm:$0xff]  ;;  %v1415_v51 = vld [vmem:[%s3244_s0 + $0x370] sm:$0xff] }
 0x32d   :  { %1207 = vst [vmem:[%s3248_s3 + $0x300] sm:$0xff] %v1079_v53  ;;  %1208 = vst [vmem:[%s3248_s3 + $0x308] sm:$0xff] %v1080_v3  ;;  %v1092_v9 = vmul.f32 %v1414_v56, %v957_v42  ;;  %v1093_v61 = vmul.f32 %v1415_v51, %v957_v42  ;;  %v1416_v53 = vld [vmem:[%s3244_s0 + $0x378] sm:$0xff]  ;;  %v965_v3 = vpop.permute.xlu1 %964 }
 0x32e   :  { %1209 = vst [vmem:[%s3248_s3 + $0x310] sm:$0xff] %v1081_v28  ;;  %1210 = vst [vmem:[%s3248_s3 + $0x318] sm:$0xff] %v1082_v32  ;;  %v1094_v39 = vmul.f32 %v1416_v53, %v957_v42  ;;  %v1103_v28 = vmul.f32 %v1417_v25, %v965_v3  ;;  %v1104_v32 = vmul.f32 %v1418_v31, %v965_v3 }
 0x32f   :  { %978 = vst.msk [vmem:[%s3247_s4 + $0x58] sm:$0xff] %vm966_vm12, %v949_v63  ;;  %981 = vst.msk [vmem:[%s3247_s4 + $0x70] sm:$0xff] %vm966_vm12, %v961_v48  ;;  %v1423_v63 = vld [vmem:[%s3244_s0 + $0x3f0] sm:$0xff] }
 0x330   :  { %1211 = vst [vmem:[%s3248_s3 + $0x320] sm:$0xff] %v1083_v52  ;;  %1212 = vst [vmem:[%s3248_s3 + $0x328] sm:$0xff] %v1084_v26  ;;  %v1105_v52 = vmul.f32 %v1419_v11, %v965_v3  ;;  %v1106_v26 = vmul.f32 %v1420_v12, %v965_v3  ;;  %v1109_v48 = vmul.f32 %v1423_v63, %v965_v3 }
 0x331   :  { %1213 = vst [vmem:[%s3248_s3 + $0x330] sm:$0xff] %v1085_v5  ;;  %1214 = vst [vmem:[%s3248_s3 + $0x338] sm:$0xff] %v1086_v0  ;;  %v1107_v5 = vmul.f32 %v1421_v47, %v965_v3  ;;  %v1108_v0 = vmul.f32 %v1422_v16, %v965_v3 }
 0x332   :  { %1199 = vst [vmem:[%s3248_s3 + $0x2c0] sm:$0xff] %v1071_v19  ;;  %1200 = vst [vmem:[%s3248_s3 + $0x2c8] sm:$0xff] %v1072_v30  ;;  %v1110_v19 = vmul.f32 %v1424_v38, %v965_v3 }
 0x333   :  { %1201 = vst [vmem:[%s3248_s3 + $0x2d0] sm:$0xff] %v1073_v34  ;;  %1202 = vst [vmem:[%s3248_s3 + $0x2d8] sm:$0xff] %v1074_v7 }
 0x334   :  { %1203 = vst [vmem:[%s3248_s3 + $0x2e0] sm:$0xff] %v1075_v20  ;;  %1204 = vst [vmem:[%s3248_s3 + $0x2e8] sm:$0xff] %v1076_v6 }
 0x335   :  { %1205 = vst [vmem:[%s3248_s3 + $0x2f0] sm:$0xff] %v1077_v43  ;;  %1206 = vst [vmem:[%s3248_s3 + $0x2f8] sm:$0xff] %v1078_v62 }
 0x336   :  { %1223 = vst [vmem:[%s3248_s3 + $0x380] sm:$0xff] %v1095_v27  ;;  %1224 = vst [vmem:[%s3248_s3 + $0x388] sm:$0xff] %v1096_v18 }
 0x337   :  { %1225 = vst [vmem:[%s3248_s3 + $0x390] sm:$0xff] %v1097_v59  ;;  %1226 = vst [vmem:[%s3248_s3 + $0x398] sm:$0xff] %v1098_v41 }
 0x338   :  { %980 = vst.msk [vmem:[%s3247_s4 + $0x68] sm:$0xff] %vm966_vm12, %v957_v42  ;;  %1227 = vst [vmem:[%s3248_s3 + $0x3a0] sm:$0xff] %v1099_v49 }
 0x339   :  { %1228 = vst [vmem:[%s3248_s3 + $0x3a8] sm:$0xff] %v1100_v55  ;;  %1229 = vst [vmem:[%s3248_s3 + $0x3b0] sm:$0xff] %v1101_v35 }
 0x33a   :  { %1230 = vst [vmem:[%s3248_s3 + $0x3b8] sm:$0xff] %v1102_v23  ;;  %1215 = vst [vmem:[%s3248_s3 + $0x340] sm:$0xff] %v1087_v33 }
 0x33b   :  { %1216 = vst [vmem:[%s3248_s3 + $0x348] sm:$0xff] %v1088_v57  ;;  %1217 = vst [vmem:[%s3248_s3 + $0x350] sm:$0xff] %v1089_v44 }
 0x33c   :  { %1218 = vst [vmem:[%s3248_s3 + $0x358] sm:$0xff] %v1090_v10  ;;  %1219 = vst [vmem:[%s3248_s3 + $0x360] sm:$0xff] %v1091_v54 }
 0x33d   :  { %1220 = vst [vmem:[%s3248_s3 + $0x368] sm:$0xff] %v1092_v9  ;;  %1221 = vst [vmem:[%s3248_s3 + $0x370] sm:$0xff] %v1093_v61 }
 0x33e   :  { %1222 = vst [vmem:[%s3248_s3 + $0x378] sm:$0xff] %v1094_v39  ;;  %982 = vst.msk [vmem:[%s3247_s4 + $0x78] sm:$0xff] %vm966_vm12, %v965_v3 }
 0x33f   :  { %1231 = vst [vmem:[%s3248_s3 + $0x3c0] sm:$0xff] %v1103_v28  ;;  %1232 = vst [vmem:[%s3248_s3 + $0x3c8] sm:$0xff] %v1104_v32 }
 0x340   :  { %1233 = vst [vmem:[%s3248_s3 + $0x3d0] sm:$0xff] %v1105_v52  ;;  %1234 = vst [vmem:[%s3248_s3 + $0x3d8] sm:$0xff] %v1106_v26 }
 0x341   :  { %1235 = vst [vmem:[%s3248_s3 + $0x3e0] sm:$0xff] %v1107_v5  ;;  %1236 = vst [vmem:[%s3248_s3 + $0x3e8] sm:$0xff] %v1108_v0 }
 0x342   :  { %1237 = vst [vmem:[%s3248_s3 + $0x3f0] sm:$0xff] %v1109_v48  ;;  %1238 = vst [vmem:[%s3248_s3 + $0x3f8] sm:$0xff] %v1110_v19 }

</bundles_post_ra>
